<compile_context>
chip_gen: v7x
topology: tpu7x:2x2x1
jax: 0.10.0
libtpu: 0.0.40
codegen_flags: <defaults>
</compile_context>

<pallas_src>
import math
import functools

import jax
import jax.numpy as jnp
from jax import lax
from jax.experimental import pallas as pl
from jax.experimental.pallas import tpu as pltpu

LN_EPS = 1e-5


def _layernorm(x, gamma, beta):
    mu = jnp.mean(x, axis=-1, keepdims=True)
    xc = x - mu
    var = jnp.mean(xc * xc, axis=-1, keepdims=True)
    return xc * jax.lax.rsqrt(var + LN_EPS) * gamma + beta


def _block_kernel(x_ref, bias_ref,
                  ln1_g_ref, ln1_b_ref, ln2_g_ref, ln2_b_ref,
                  wqkv_ref, bqkv_ref, wo_ref, bo_ref,
                  w1_ref, b1_ref, w2_ref, b2_ref,
                  o_ref,
                  xn2_ref, acc_ref,
                  *, num_heads, heads_per_group, compute_dtype):
    h_tile = pl.program_id(1)
    n_h_tiles = pl.num_programs(1)

    TB, S, D = x_ref.shape
    M = TB * S
    hd = D // num_heads
    gd = heads_per_group * hd
    n_groups = num_heads // heads_per_group
    cd = compute_dtype

    # ---- ln_1 + attention + ln_2 : once per batch block (first hidden tile) ----
    @pl.when(h_tile == 0)
    def _attention():
        x = x_ref[...].reshape(M, D).astype(jnp.float32)              # (M, D) f32
        xn = _layernorm(x, ln1_g_ref[0], ln1_b_ref[0])
        xn_cd = xn.astype(cd)                                         # single cast, reused per group

        # bias broadcast hoisted out of the head-group loop (JAX does not CSE it).
        bias_b = jnp.broadcast_to(bias_ref[...][None], (TB, S, S))

        # first residual + out_proj bias; per-group W_o contributions accumulate below.
        acc_ref[...] = x + bo_ref[0]

        def group_body(g, carry):
            # fused per-group QKV projection: one (M,D)x(D,3*gd) MXU op.
            # (1/sqrt(hd) already folded into the q columns/bias on the host.)
            qkv_g = (jnp.dot(xn_cd, wqkv_ref[g],
                             preferred_element_type=jnp.float32)
                     + bqkv_ref[g]).astype(cd)                        # (M, 3*gd), compute dtype
            ctx_parts = []
            for j in range(heads_per_group):                          # small static loop in-group
                lo = j * hd
                qh = qkv_g[:, lo:lo + hd].reshape(TB, S, hd)
                kh = qkv_g[:, gd + lo:gd + lo + hd].reshape(TB, S, hd)
                vh = qkv_g[:, 2 * gd + lo:2 * gd + lo + hd].reshape(TB, S, hd)
                s = jnp.einsum('bqd,bkd->bqk', qh, kh,
                               preferred_element_type=jnp.float32) + bias_b
                s = s - jnp.max(s, axis=-1, keepdims=True)
                p = jnp.exp(s)
                l = jnp.sum(p, axis=-1, keepdims=True)
                ctx = jnp.einsum('bqk,bkd->bqd', p.astype(cd), vh,
                                 preferred_element_type=jnp.float32)  # (TB, S, hd)
                # normalise the hd-wide context instead of the S-wide probabilities
                ctx = ctx * pl.reciprocal(l, approx=True)
                ctx_parts.append(ctx.reshape(M, hd).astype(cd))
            ctx_g = ctx_parts[0] if heads_per_group == 1 else jnp.concatenate(ctx_parts, axis=-1)
            # W_o folded per head-group: K = heads_per_group*hd fills the MXU depth.
            acc_ref[...] += jnp.dot(ctx_g, wo_ref[g],
                                    preferred_element_type=jnp.float32)
            return carry

        lax.fori_loop(0, n_groups, group_body, 0)

        x1 = acc_ref[...]                                             # x + attn_out (f32)
        xn2_ref[...] = _layernorm(x1, ln2_g_ref[0], ln2_b_ref[0]).astype(cd)

    # ---- MLP (c_fc -> QuickGELU -> c_proj), tiled over the hidden dim (grid axis 1) ----
    hidden = jnp.dot(xn2_ref[...], w1_ref[...],
                     preferred_element_type=jnp.float32) + b1_ref[0]
    hidden = hidden * jax.nn.sigmoid(1.702 * hidden)                  # QuickGELU, f32
    acc_ref[...] += jnp.dot(hidden.astype(cd), w2_ref[...],
                            preferred_element_type=jnp.float32)

    @pl.when(h_tile == n_h_tiles - 1)
    def _finalize():
        o_ref[...] = (acc_ref[...] + b2_ref[0]).reshape(TB, S, D).astype(o_ref.dtype)


def residual_attention_block(x_sbd, attn_bias, params, num_heads, *,
                             tb=None, th=None, heads_per_group=None,
                             compute_dtype=jnp.bfloat16,
                             vmem_limit_bytes=None):
    """x_sbd: (seq_len, batch, embed) f32; attn_bias: (seq_len, seq_len) or None."""
    S, B, D = x_sbd.shape
    H = params["w1"].shape[0]
    assert D % num_heads == 0
    hd = D // num_heads

    if attn_bias is None:
        attn_bias = jnp.zeros((S, S), jnp.float32)

    # batch tile: aim for M = tb*S <= ~1024 and at least 2 batch tiles (v7x megacore).
    if tb is None:
        tb = 1
        for d in range(1, B + 1):
            if B % d == 0 and d * S <= 1024 and (B // d >= 2 or B == 1):
                tb = d
    assert B % tb == 0, "batch must be divisible by the batch tile"

    # hidden tile: large enough to amortise the ~0.35us per-grid-step overhead.
    if th is None:
        th = H
        for cand in (2048, 1024, 512, 256, 128):
            if H % cand == 0:
                th = cand
                break
    assert H % th == 0 and (th == H or th % 128 == 0), "hidden tile must be 128-multiple"

    # head grouping for the W_o fold: K = heads_per_group*hd ~ 256 (MXU depth).
    if heads_per_group is None:
        heads_per_group = max(1, min(num_heads, 256 // hd)) if hd <= 256 else 1
        while num_heads % heads_per_group:
            heads_per_group -= 1
    assert num_heads % heads_per_group == 0
    gd = heads_per_group * hd
    n_groups = num_heads // heads_per_group

    if vmem_limit_bytes is None:
        try:
            cap = pltpu.get_tpu_info().vmem_capacity_bytes
            vmem_limit_bytes = min(100 * 1024 * 1024, int(cap) * 3 // 4)
        except Exception:
            vmem_limit_bytes = 48 * 1024 * 1024

    cd = compute_dtype
    scale = 1.0 / math.sqrt(hd)

    # host-side (one-time under jit): pre-transpose, fold 1/sqrt(hd) into Wq/bq, and lay
    # weights out group-major so the kernel indexes them on a leading (group) axis.
    def group_major(w_t):                       # (D_in, D_out) -> (n_groups, D_in, gd)
        return jnp.transpose(w_t.reshape(D, n_groups, gd), (1, 0, 2))

    wq_t = (params["wq"] * scale).T
    wk_t = params["wk"].T
    wv_t = params["wv"].T
    wqkv_g = jnp.concatenate([group_major(wq_t), group_major(wk_t), group_major(wv_t)],
                             axis=2).astype(cd)                          # (n_groups, D, 3*gd)
    bq = (params["bq"][0] * scale).reshape(n_groups, gd)
    bk = params["bk"][0].reshape(n_groups, gd)
    bv = params["bv"][0].reshape(n_groups, gd)
    bqkv_g = jnp.concatenate([bq, bk, bv], axis=1).reshape(n_groups, 1, 3 * gd).astype(jnp.float32)
    wo_g = params["wo"].T.reshape(n_groups, gd, D).astype(cd)            # (n_groups, gd, D)
    w1_t = params["w1"].T.astype(cd)                                     # (D, H)
    w2_t = params["w2"].T.astype(cd)                                     # (H, D)

    # (S,B,D) -> (B,S,D): attention einsums keep a single leading batch dim.
    x_bsd = jnp.transpose(x_sbd, (1, 0, 2)).astype(jnp.float32)

    grid = (B // tb, H // th)
    kernel = functools.partial(_block_kernel, num_heads=num_heads,
                               heads_per_group=heads_per_group, compute_dtype=cd)

    def _call(single_buffer_constants):
        def const_spec(shape):
            zeros = (0,) * len(shape)
            kw = {}
            if single_buffer_constants:
                kw["pipeline_mode"] = pl.Buffered(1)     # fetched once; no 2nd buffer
            return pl.BlockSpec(shape, lambda b, h: zeros, **kw)

        out = pl.pallas_call(
            kernel,
            out_shape=jax.ShapeDtypeStruct((B, S, D), x_sbd.dtype),
            grid=grid,
            in_specs=[
                pl.BlockSpec((tb, S, D), lambda b, h: (b, 0, 0)),        # x
                const_spec((S, S)),                                      # attn_bias
                const_spec((1, D)), const_spec((1, D)),                  # ln_1 gamma/beta
                const_spec((1, D)), const_spec((1, D)),                  # ln_2 gamma/beta
                const_spec((n_groups, D, 3 * gd)),                       # fused qkv W^T (group-major)
                const_spec((n_groups, 1, 3 * gd)),                       # fused qkv bias
                const_spec((n_groups, gd, D)),                           # out_proj W^T (group-major)
                const_spec((1, D)),                                      # out_proj bias
                pl.BlockSpec((D, th), lambda b, h: (0, h)),              # c_fc W^T tile
                pl.BlockSpec((1, th), lambda b, h: (0, h)),              # c_fc bias tile
                pl.BlockSpec((th, D), lambda b, h: (h, 0)),              # c_proj W^T tile
                const_spec((1, D)),                                      # c_proj bias
            ],
            out_specs=pl.BlockSpec((tb, S, D), lambda b, h: (b, 0, 0)),
            scratch_shapes=[
                pltpu.VMEM((tb * S, D), cd),            # ln_2 output (matmul-input dtype)
                pltpu.VMEM((tb * S, D), jnp.float32),   # residual + W_o/MLP accumulator
            ],
            compiler_params=pltpu.CompilerParams(
                dimension_semantics=("parallel", "arbitrary"),
                vmem_limit_bytes=vmem_limit_bytes,
            ),
        )(x_bsd, attn_bias.astype(jnp.float32),
          params["ln1_g"].astype(jnp.float32), params["ln1_b"].astype(jnp.float32),
          params["ln2_g"].astype(jnp.float32), params["ln2_b"].astype(jnp.float32),
          wqkv_g, bqkv_g, wo_g, params["bo"].astype(jnp.float32),
          w1_t, params["b1"].astype(jnp.float32), w2_t, params["b2"].astype(jnp.float32))
        return jax.block_until_ready(out)

    try:
        out_bsd = _call(True)
    except Exception:
        # pipeline_mode=pl.Buffered(1) not supported on this JAX version -> default buffering.
        out_bsd = _call(False)

    return jnp.transpose(out_bsd, (1, 0, 2))             # back to (S, B, D)


def _reference(x_sbd, attn_bias, params, num_heads):
    """Pure-JAX reference mirroring the PyTorch forward (correctness check)."""
    S, B, D = x_sbd.shape
    hd = D // num_heads

    def ln(x, g, b):
        mu = jnp.mean(x, -1, keepdims=True)
        var = jnp.mean((x - mu) ** 2, -1, keepdims=True)
        return (x - mu) / jnp.sqrt(var + LN_EPS) * g[0] + b[0]

    x = x_sbd
    xn = ln(x, params["ln1_g"], params["ln1_b"])
    q = xn @ params["wq"].T + params["bq"][0]
    k = xn @ params["wk"].T + params["bk"][0]
    v = xn @ params["wv"].T + params["bv"][0]

    def reshape(t):  # (S,B,D) -> (heads, B, S, hd)
        return jnp.transpose(t.reshape(S, B, num_heads, hd), (2, 1, 0, 3))

    Q, K, V = reshape(q), reshape(k), reshape(v)
    scores = Q @ jnp.swapaxes(K, -2, -1) / math.sqrt(hd) + attn_bias[None, None]
    w = jax.nn.softmax(scores, axis=-1)
    o = w @ V                                              # (heads, B, S, hd)
    o = jnp.transpose(o, (2, 1, 0, 3)).reshape(S, B, D)
    attn_out = o @ params["wo"].T + params["bo"][0]
    x = x + attn_out
    xn = ln(x, params["ln2_g"], params["ln2_b"])
    h = xn @ params["w1"].T + params["b1"][0]
    h = h * jax.nn.sigmoid(1.702 * h)
    return x + h @ params["w2"].T + params["b2"][0]


if __name__ == "__main__":
    S, B, D, NH = 8, 4, 64, 4
    H = 4 * D

    key = jax.random.PRNGKey(0)
    ks = jax.random.split(key, 16)

    def w(k, shape, scale=0.05):
        return (scale * jax.random.normal(k, shape)).astype(jnp.float32)

    params = {
        "ln1_g": jnp.ones((1, D), jnp.float32), "ln1_b": jnp.zeros((1, D), jnp.float32),
        "ln2_g": jnp.ones((1, D), jnp.float32), "ln2_b": jnp.zeros((1, D), jnp.float32),
        "wq": w(ks[0], (D, D)), "bq": w(ks[1], (1, D)),
        "wk": w(ks[2], (D, D)), "bk": w(ks[3], (1, D)),
        "wv": w(ks[4], (D, D)), "bv": w(ks[5], (1, D)),
        "wo": w(ks[6], (D, D)), "bo": w(ks[7], (1, D)),
        "w1": w(ks[8], (H, D)), "b1": w(ks[9], (1, H)),
        "w2": w(ks[10], (D, H)), "b2": w(ks[11], (1, D)),
    }

    x = jax.random.normal(ks[12], (S, B, D), dtype=jnp.float32)
    attn_bias = 0.1 * jax.random.normal(ks[13], (S, S), dtype=jnp.float32)

    ref = _reference(x, attn_bias, params, NH)

    # f32 compute path, 2 head groups (exercises the multi-group fori_loop); tight tolerance.
    out_f32 = residual_attention_block(x, attn_bias, params, NH,
                                       tb=2, th=128, heads_per_group=2,
                                       compute_dtype=jnp.float32)
    out_f32 = jax.block_until_ready(out_f32)
    assert out_f32.shape == (S, B, D)
    assert jnp.allclose(out_f32, ref, atol=2e-3, rtol=2e-3), "f32 mismatch vs reference"

    # bf16 matmul-input path, default grouping (single group of 4 heads); looser tolerance.
    out_bf16 = residual_attention_block(x, attn_bias, params, NH,
                                        tb=2, th=128, compute_dtype=jnp.bfloat16)
    out_bf16 = jax.block_until_ready(out_bf16)
    assert jnp.allclose(out_bf16, ref, atol=5e-2, rtol=5e-2), "bf16 mismatch vs reference"

    print("KERNEL_OK")
</pallas_src>

<mosaic_0001>
module attributes {stable_mosaic.version = 11 : i64} {
  func.func @_block_kernel(%arg0: i32, %arg1: i32, %arg2: memref<2x8x64xf32, #tpu.memory_space<vmem>>, %arg3: memref<8x8xf32, #tpu.memory_space<vmem>>, %arg4: memref<1x64xf32, #tpu.memory_space<vmem>>, %arg5: memref<1x64xf32, #tpu.memory_space<vmem>>, %arg6: memref<1x64xf32, #tpu.memory_space<vmem>>, %arg7: memref<1x64xf32, #tpu.memory_space<vmem>>, %arg8: memref<2x64x96xf32, #tpu.memory_space<vmem>>, %arg9: memref<2x1x96xf32, #tpu.memory_space<vmem>>, %arg10: memref<2x32x64xf32, #tpu.memory_space<vmem>>, %arg11: memref<1x64xf32, #tpu.memory_space<vmem>>, %arg12: memref<64x128xf32, #tpu.memory_space<vmem>>, %arg13: memref<1x128xf32, #tpu.memory_space<vmem>>, %arg14: memref<128x64xf32, #tpu.memory_space<vmem>>, %arg15: memref<1x64xf32, #tpu.memory_space<vmem>>, %arg16: memref<2x8x64xf32, #tpu.memory_space<vmem>>, %arg17: memref<16x64xf32, #tpu.memory_space<vmem>>, %arg18: memref<16x64xf32, #tpu.memory_space<vmem>>) attributes {dimension_semantics = [#tpu.dimension_semantics<parallel>, #tpu.dimension_semantics<arbitrary>], iteration_bounds = array<i64: 2, 2>, scalar_prefetch = 0 : i64, scratch_operands = 2 : i64, tpu.core_type = #tpu.core_type<tc>, window_params = [{transform_indices = @transform_0, window_bounds = array<i64: 2, 8, 64>}, {pipeline_mode = #tpu.pipeline_mode<synchronous>, transform_indices = @transform_1, window_bounds = array<i64: 8, 8>}, {pipeline_mode = #tpu.pipeline_mode<synchronous>, transform_indices = @transform_2, window_bounds = array<i64: 1, 64>}, {pipeline_mode = #tpu.pipeline_mode<synchronous>, transform_indices = @transform_3, window_bounds = array<i64: 1, 64>}, {pipeline_mode = #tpu.pipeline_mode<synchronous>, transform_indices = @transform_4, window_bounds = array<i64: 1, 64>}, {pipeline_mode = #tpu.pipeline_mode<synchronous>, transform_indices = @transform_5, window_bounds = array<i64: 1, 64>}, {pipeline_mode = #tpu.pipeline_mode<synchronous>, transform_indices = @transform_6, window_bounds = array<i64: 2, 64, 96>}, {pipeline_mode = #tpu.pipeline_mode<synchronous>, transform_indices = @transform_7, window_bounds = array<i64: 2, 1, 96>}, {pipeline_mode = #tpu.pipeline_mode<synchronous>, transform_indices = @transform_8, window_bounds = array<i64: 2, 32, 64>}, {pipeline_mode = #tpu.pipeline_mode<synchronous>, transform_indices = @transform_9, window_bounds = array<i64: 1, 64>}, {transform_indices = @transform_10, window_bounds = array<i64: 64, 128>}, {transform_indices = @transform_11, window_bounds = array<i64: 1, 128>}, {transform_indices = @transform_12, window_bounds = array<i64: 128, 64>}, {pipeline_mode = #tpu.pipeline_mode<synchronous>, transform_indices = @transform_13, window_bounds = array<i64: 1, 64>}, {transform_indices = @transform_14, window_bounds = array<i64: 2, 8, 64>}]} {
    %c0_i32 = arith.constant 0 : i32
    %0 = arith.cmpi eq, %arg1, %c0_i32 : i32
    %1 = arith.extui %0 : i1 to i32
    %c0_i32_0 = arith.constant 0 : i32
    %2 = arith.cmpi ne, %1, %c0_i32_0 : i32
    scf.if %2 {
      %c0_16 = arith.constant 0 : index
      %c0_17 = arith.constant 0 : index
      %c0_18 = arith.constant 0 : index
      %27 = vector.load %arg2[%c0_16, %c0_17, %c0_18] : memref<2x8x64xf32, #tpu.memory_space<vmem>>, vector<2x8x64xf32>
      %28 = vector.shape_cast %27 : vector<2x8x64xf32> to vector<16x64xf32>
      %c0_19 = arith.constant 0 : index
      %c0_20 = arith.constant 0 : index
      %29 = vector.load %arg4[%c0_19, %c0_20] : memref<1x64xf32, #tpu.memory_space<vmem>>, vector<1x64xf32>
      %30 = vector.shape_cast %29 : vector<1x64xf32> to vector<64xf32>
      %c0_21 = arith.constant 0 : index
      %c0_22 = arith.constant 0 : index
      %31 = vector.load %arg5[%c0_21, %c0_22] : memref<1x64xf32, #tpu.memory_space<vmem>>, vector<1x64xf32>
      %32 = vector.shape_cast %31 : vector<1x64xf32> to vector<64xf32>
      %cst_23 = arith.constant dense<0.000000e+00> : vector<16xf32>
      %33 = vector.multi_reduction <add>, %28, %cst_23 [1] : vector<16x64xf32> to vector<16xf32>
      %34 = vector.shape_cast %33 : vector<16xf32> to vector<16x1xf32>
      %cst_24 = arith.constant 6.400000e+01 : f32
      %35 = vector.broadcast %cst_24 : f32 to vector<16x1xf32>
      %36 = arith.divf %34, %35 : vector<16x1xf32>
      %37 = vector.broadcast %36 : vector<16x1xf32> to vector<16x64xf32>
      %38 = arith.subf %28, %37 : vector<16x64xf32>
      %39 = arith.mulf %38, %38 : vector<16x64xf32>
      %cst_25 = arith.constant dense<0.000000e+00> : vector<16xf32>
      %40 = vector.multi_reduction <add>, %39, %cst_25 [1] : vector<16x64xf32> to vector<16xf32>
      %41 = vector.shape_cast %40 : vector<16xf32> to vector<16x1xf32>
      %cst_26 = arith.constant 6.400000e+01 : f32
      %42 = vector.broadcast %cst_26 : f32 to vector<16x1xf32>
      %43 = arith.divf %41, %42 : vector<16x1xf32>
      %cst_27 = arith.constant 9.99999974E-6 : f32
      %44 = vector.broadcast %cst_27 : f32 to vector<16x1xf32>
      %45 = arith.addf %43, %44 : vector<16x1xf32>
      %46 = math.rsqrt %45 : vector<16x1xf32>
      %47 = vector.broadcast %46 : vector<16x1xf32> to vector<16x64xf32>
      %48 = arith.mulf %38, %47 : vector<16x64xf32>
      %49 = vector.shape_cast %30 : vector<64xf32> to vector<1x64xf32>
      %50 = vector.broadcast %49 : vector<1x64xf32> to vector<16x64xf32>
      %51 = arith.mulf %48, %50 : vector<16x64xf32>
      %52 = vector.shape_cast %32 : vector<64xf32> to vector<1x64xf32>
      %53 = vector.broadcast %52 : vector<1x64xf32> to vector<16x64xf32>
      %54 = arith.addf %51, %53 : vector<16x64xf32>
      %c0_28 = arith.constant 0 : index
      %c0_29 = arith.constant 0 : index
      %55 = vector.load %arg3[%c0_28, %c0_29] : memref<8x8xf32, #tpu.memory_space<vmem>>, vector<8x8xf32>
      %56 = vector.shape_cast %55 : vector<8x8xf32> to vector<1x8x8xf32>
      %57 = vector.shape_cast %56 : vector<1x8x8xf32> to vector<1x8x8xf32>
      %58 = vector.broadcast %57 : vector<1x8x8xf32> to vector<2x8x8xf32>
      %c0_30 = arith.constant 0 : index
      %c0_31 = arith.constant 0 : index
      %59 = vector.load %arg11[%c0_30, %c0_31] : memref<1x64xf32, #tpu.memory_space<vmem>>, vector<1x64xf32>
      %60 = vector.shape_cast %59 : vector<1x64xf32> to vector<64xf32>
      %61 = vector.shape_cast %60 : vector<64xf32> to vector<1x64xf32>
      %62 = vector.broadcast %61 : vector<1x64xf32> to vector<16x64xf32>
      %63 = arith.addf %28, %62 : vector<16x64xf32>
      %c0_32 = arith.constant 0 : index
      %c0_33 = arith.constant 0 : index
      %64 = vector.load %arg18[%c0_32, %c0_33] : memref<16x64xf32, #tpu.memory_space<vmem>>, vector<16x64xf32>
      tpu.vector_store %arg18[%c0_32, %c0_33], %63 {strides = array<i32>} : memref<16x64xf32, #tpu.memory_space<vmem>>, vector<16x64xf32>,
      %c0_i32_34 = arith.constant 0 : i32
      %c2_i32 = arith.constant 2 : i32
      %65 = arith.addi %c0_i32_34, %c2_i32 : i32
      %c1_i32_35 = arith.constant 1 : i32
      scf.for %arg19 = %c0_i32_34 to %65 step %c1_i32_35  : i32 {
        %94 = arith.index_cast %arg19 : i32 to index
        %c0_50 = arith.constant 0 : index
        %c0_51 = arith.constant 0 : index
        %95 = vector.load %arg8[%94, %c0_50, %c0_51] : memref<2x64x96xf32, #tpu.memory_space<vmem>>, vector<1x64x96xf32>
        %96 = vector.shape_cast %95 : vector<1x64x96xf32> to vector<64x96xf32>
        %cst_52 = arith.constant dense<0.000000e+00> : vector<16x96xf32>
        %97 = tpu.matmul %54, %96, %cst_52 {dimension_numbers = #tpu.dot_dimension_numbers<[1], [0], [0], [1], [0, 0, 1, 1], [], []>} : vector<16x64xf32>, vector<64x96xf32>, vector<16x96xf32> -> vector<16x96xf32>
        %98 = arith.index_cast %arg19 : i32 to index
        %c0_53 = arith.constant 0 : index
        %c0_54 = arith.constant 0 : index
        %99 = vector.load %arg9[%98, %c0_53, %c0_54] : memref<2x1x96xf32, #tpu.memory_space<vmem>>, vector<1x1x96xf32>
        %100 = vector.shape_cast %99 : vector<1x1x96xf32> to vector<1x96xf32>
        %101 = vector.broadcast %100 : vector<1x96xf32> to vector<16x96xf32>
        %102 = arith.addf %97, %101 : vector<16x96xf32>
        %103 = vector.extract_strided_slice %102 {offsets = [0, 0], sizes = [16, 16], strides = [1, 1]} : vector<16x96xf32> to vector<16x16xf32>
        %104 = vector.shape_cast %103 : vector<16x16xf32> to vector<2x8x16xf32>
        %105 = vector.extract_strided_slice %102 {offsets = [0, 32], sizes = [16, 16], strides = [1, 1]} : vector<16x96xf32> to vector<16x16xf32>
        %106 = vector.shape_cast %105 : vector<16x16xf32> to vector<2x8x16xf32>
        %107 = vector.extract_strided_slice %102 {offsets = [0, 64], sizes = [16, 16], strides = [1, 1]} : vector<16x96xf32> to vector<16x16xf32>
        %108 = vector.shape_cast %107 : vector<16x16xf32> to vector<2x8x16xf32>
        "tpu.trace_start"() <{level = 10 : i32, message = "bqd,bkd->bqk"}> : () -> ()
        %cst_55 = arith.constant dense<0.000000e+00> : vector<2x8x8xf32>
        %109 = tpu.matmul %104, %106, %cst_55 {dimension_numbers = #tpu.dot_dimension_numbers<[2], [2], [1], [1], [0, 0, 0, 1, 1, 1], [0], [0]>} : vector<2x8x16xf32>, vector<2x8x16xf32>, vector<2x8x8xf32> -> vector<2x8x8xf32>
        "tpu.trace_stop"() : () -> ()
        %110 = arith.addf %109, %58 : vector<2x8x8xf32>
        %cst_56 = arith.constant dense<0xFF800000> : vector<2x8xf32>
        %111 = vector.multi_reduction <maximumf>, %110, %cst_56 [2] : vector<2x8x8xf32> to vector<2x8xf32>
        %112 = vector.shape_cast %111 : vector<2x8xf32> to vector<2x8x1xf32>
        %113 = vector.broadcast %112 : vector<2x8x1xf32> to vector<2x8x8xf32>
        %114 = arith.subf %110, %113 : vector<2x8x8xf32>
        %115 = math.exp %114 : vector<2x8x8xf32>
        %cst_57 = arith.constant dense<0.000000e+00> : vector<2x8xf32>
        %116 = vector.multi_reduction <add>, %115, %cst_57 [2] : vector<2x8x8xf32> to vector<2x8xf32>
        %117 = vector.shape_cast %116 : vector<2x8xf32> to vector<2x8x1xf32>
        "tpu.trace_start"() <{level = 10 : i32, message = "bqk,bkd->bqd"}> : () -> ()
        %cst_58 = arith.constant dense<0.000000e+00> : vector<2x8x16xf32>
        %118 = tpu.matmul %115, %108, %cst_58 {dimension_numbers = #tpu.dot_dimension_numbers<[2], [1], [1], [2], [0, 0, 0, 1, 1, 2], [0], [0]>} : vector<2x8x8xf32>, vector<2x8x16xf32>, vector<2x8x16xf32> -> vector<2x8x16xf32>
        "tpu.trace_stop"() : () -> ()
        %119 = tpu.reciprocal %117 {approx = true} : vector<2x8x1xf32> -> vector<2x8x1xf32>
        %120 = vector.broadcast %119 : vector<2x8x1xf32> to vector<2x8x16xf32>
        %121 = arith.mulf %118, %120 : vector<2x8x16xf32>
        %122 = vector.shape_cast %121 : vector<2x8x16xf32> to vector<16x16xf32>
        %123 = vector.extract_strided_slice %102 {offsets = [0, 16], sizes = [16, 16], strides = [1, 1]} : vector<16x96xf32> to vector<16x16xf32>
        %124 = vector.shape_cast %123 : vector<16x16xf32> to vector<2x8x16xf32>
        %125 = vector.extract_strided_slice %102 {offsets = [0, 48], sizes = [16, 16], strides = [1, 1]} : vector<16x96xf32> to vector<16x16xf32>
        %126 = vector.shape_cast %125 : vector<16x16xf32> to vector<2x8x16xf32>
        %127 = vector.extract_strided_slice %102 {offsets = [0, 80], sizes = [16, 16], strides = [1, 1]} : vector<16x96xf32> to vector<16x16xf32>
        %128 = vector.shape_cast %127 : vector<16x16xf32> to vector<2x8x16xf32>
        "tpu.trace_start"() <{level = 10 : i32, message = "bqd,bkd->bqk"}> : () -> ()
        %cst_59 = arith.constant dense<0.000000e+00> : vector<2x8x8xf32>
        %129 = tpu.matmul %124, %126, %cst_59 {dimension_numbers = #tpu.dot_dimension_numbers<[2], [2], [1], [1], [0, 0, 0, 1, 1, 1], [0], [0]>} : vector<2x8x16xf32>, vector<2x8x16xf32>, vector<2x8x8xf32> -> vector<2x8x8xf32>
        "tpu.trace_stop"() : () -> ()
        %130 = arith.addf %129, %58 : vector<2x8x8xf32>
        %cst_60 = arith.constant dense<0xFF800000> : vector<2x8xf32>
        %131 = vector.multi_reduction <maximumf>, %130, %cst_60 [2] : vector<2x8x8xf32> to vector<2x8xf32>
        %132 = vector.shape_cast %131 : vector<2x8xf32> to vector<2x8x1xf32>
        %133 = vector.broadcast %132 : vector<2x8x1xf32> to vector<2x8x8xf32>
        %134 = arith.subf %130, %133 : vector<2x8x8xf32>
        %135 = math.exp %134 : vector<2x8x8xf32>
        %cst_61 = arith.constant dense<0.000000e+00> : vector<2x8xf32>
        %136 = vector.multi_reduction <add>, %135, %cst_61 [2] : vector<2x8x8xf32> to vector<2x8xf32>
        %137 = vector.shape_cast %136 : vector<2x8xf32> to vector<2x8x1xf32>
        "tpu.trace_start"() <{level = 10 : i32, message = "bqk,bkd->bqd"}> : () -> ()
        %cst_62 = arith.constant dense<0.000000e+00> : vector<2x8x16xf32>
        %138 = tpu.matmul %135, %128, %cst_62 {dimension_numbers = #tpu.dot_dimension_numbers<[2], [1], [1], [2], [0, 0, 0, 1, 1, 2], [0], [0]>} : vector<2x8x8xf32>, vector<2x8x16xf32>, vector<2x8x16xf32> -> vector<2x8x16xf32>
        "tpu.trace_stop"() : () -> ()
        %139 = tpu.reciprocal %137 {approx = true} : vector<2x8x1xf32> -> vector<2x8x1xf32>
        %140 = vector.broadcast %139 : vector<2x8x1xf32> to vector<2x8x16xf32>
        %141 = arith.mulf %138, %140 : vector<2x8x16xf32>
        %142 = vector.shape_cast %141 : vector<2x8x16xf32> to vector<16x16xf32>
        %143 = tpu.concatenate %122, %142 in 1 : vector<16x16xf32>, vector<16x16xf32> -> vector<16x32xf32>
        %c0_63 = arith.constant 0 : index
        %c0_64 = arith.constant 0 : index
        %144 = vector.load %arg18[%c0_63, %c0_64] : memref<16x64xf32, #tpu.memory_space<vmem>>, vector<16x64xf32>
        %145 = arith.index_cast %arg19 : i32 to index
        %c0_65 = arith.constant 0 : index
        %c0_66 = arith.constant 0 : index
        %146 = vector.load %arg10[%145, %c0_65, %c0_66] : memref<2x32x64xf32, #tpu.memory_space<vmem>>, vector<1x32x64xf32>
        %147 = vector.shape_cast %146 : vector<1x32x64xf32> to vector<32x64xf32>
        %cst_67 = arith.constant dense<0.000000e+00> : vector<16x64xf32>
        %148 = tpu.matmul %143, %147, %cst_67 {dimension_numbers = #tpu.dot_dimension_numbers<[1], [0], [0], [1], [0, 0, 1, 1], [], []>} : vector<16x32xf32>, vector<32x64xf32>, vector<16x64xf32> -> vector<16x64xf32>
        %149 = arith.addf %144, %148 : vector<16x64xf32>
        %c0_68 = arith.constant 0 : index
        %c0_69 = arith.constant 0 : index
        %150 = vector.load %arg18[%c0_68, %c0_69] : memref<16x64xf32, #tpu.memory_space<vmem>>, vector<16x64xf32>
        tpu.vector_store %arg18[%c0_68, %c0_69], %149 {strides = array<i32>} : memref<16x64xf32, #tpu.memory_space<vmem>>, vector<16x64xf32>,
      }
      %c2_i32_36 = arith.constant 2 : i32
      %c0_37 = arith.constant 0 : index
      %c0_38 = arith.constant 0 : index
      %66 = vector.load %arg18[%c0_37, %c0_38] : memref<16x64xf32, #tpu.memory_space<vmem>>, vector<16x64xf32>
      %c0_39 = arith.constant 0 : index
      %c0_40 = arith.constant 0 : index
      %67 = vector.load %arg6[%c0_39, %c0_40] : memref<1x64xf32, #tpu.memory_space<vmem>>, vector<1x64xf32>
      %68 = vector.shape_cast %67 : vector<1x64xf32> to vector<64xf32>
      %c0_41 = arith.constant 0 : index
      %c0_42 = arith.constant 0 : index
      %69 = vector.load %arg7[%c0_41, %c0_42] : memref<1x64xf32, #tpu.memory_space<vmem>>, vector<1x64xf32>
      %70 = vector.shape_cast %69 : vector<1x64xf32> to vector<64xf32>
      %cst_43 = arith.constant dense<0.000000e+00> : vector<16xf32>
      %71 = vector.multi_reduction <add>, %66, %cst_43 [1] : vector<16x64xf32> to vector<16xf32>
      %72 = vector.shape_cast %71 : vector<16xf32> to vector<16x1xf32>
      %cst_44 = arith.constant 6.400000e+01 : f32
      %73 = vector.broadcast %cst_44 : f32 to vector<16x1xf32>
      %74 = arith.divf %72, %73 : vector<16x1xf32>
      %75 = vector.broadcast %74 : vector<16x1xf32> to vector<16x64xf32>
      %76 = arith.subf %66, %75 : vector<16x64xf32>
      %77 = arith.mulf %76, %76 : vector<16x64xf32>
      %cst_45 = arith.constant dense<0.000000e+00> : vector<16xf32>
      %78 = vector.multi_reduction <add>, %77, %cst_45 [1] : vector<16x64xf32> to vector<16xf32>
      %79 = vector.shape_cast %78 : vector<16xf32> to vector<16x1xf32>
      %cst_46 = arith.constant 6.400000e+01 : f32
      %80 = vector.broadcast %cst_46 : f32 to vector<16x1xf32>
      %81 = arith.divf %79, %80 : vector<16x1xf32>
      %cst_47 = arith.constant 9.99999974E-6 : f32
      %82 = vector.broadcast %cst_47 : f32 to vector<16x1xf32>
      %83 = arith.addf %81, %82 : vector<16x1xf32>
      %84 = math.rsqrt %83 : vector<16x1xf32>
      %85 = vector.broadcast %84 : vector<16x1xf32> to vector<16x64xf32>
      %86 = arith.mulf %76, %85 : vector<16x64xf32>
      %87 = vector.shape_cast %68 : vector<64xf32> to vector<1x64xf32>
      %88 = vector.broadcast %87 : vector<1x64xf32> to vector<16x64xf32>
      %89 = arith.mulf %86, %88 : vector<16x64xf32>
      %90 = vector.shape_cast %70 : vector<64xf32> to vector<1x64xf32>
      %91 = vector.broadcast %90 : vector<1x64xf32> to vector<16x64xf32>
      %92 = arith.addf %89, %91 : vector<16x64xf32>
      %c0_48 = arith.constant 0 : index
      %c0_49 = arith.constant 0 : index
      %93 = vector.load %arg17[%c0_48, %c0_49] : memref<16x64xf32, #tpu.memory_space<vmem>>, vector<16x64xf32>
      tpu.vector_store %arg17[%c0_48, %c0_49], %92 {strides = array<i32>} : memref<16x64xf32, #tpu.memory_space<vmem>>, vector<16x64xf32>,
    } else {
    }
    %c0 = arith.constant 0 : index
    %c0_1 = arith.constant 0 : index
    %3 = vector.load %arg17[%c0, %c0_1] : memref<16x64xf32, #tpu.memory_space<vmem>>, vector<16x64xf32>
    %c0_2 = arith.constant 0 : index
    %c0_3 = arith.constant 0 : index
    %4 = vector.load %arg12[%c0_2, %c0_3] : memref<64x128xf32, #tpu.memory_space<vmem>>, vector<64x128xf32>
    %cst = arith.constant dense<0.000000e+00> : vector<16x128xf32>
    %5 = tpu.matmul %3, %4, %cst {dimension_numbers = #tpu.dot_dimension_numbers<[1], [0], [0], [1], [0, 0, 1, 1], [], []>} : vector<16x64xf32>, vector<64x128xf32>, vector<16x128xf32> -> vector<16x128xf32>
    %c0_4 = arith.constant 0 : index
    %c0_5 = arith.constant 0 : index
    %6 = vector.load %arg13[%c0_4, %c0_5] : memref<1x128xf32, #tpu.memory_space<vmem>>, vector<1x128xf32>
    %7 = vector.shape_cast %6 : vector<1x128xf32> to vector<128xf32>
    %8 = vector.shape_cast %7 : vector<128xf32> to vector<1x128xf32>
    %9 = vector.broadcast %8 : vector<1x128xf32> to vector<16x128xf32>
    %10 = arith.addf %5, %9 : vector<16x128xf32>
    %cst_6 = arith.constant 1.702000e+00 : f32
    %11 = vector.broadcast %cst_6 : f32 to vector<16x128xf32>
    %12 = arith.mulf %11, %10 : vector<16x128xf32>
    %13 = arith.negf %12 : vector<16x128xf32>
    %14 = math.exp %13 : vector<16x128xf32>
    %cst_7 = arith.constant 1.000000e+00 : f32
    %15 = vector.broadcast %cst_7 : f32 to vector<16x128xf32>
    %16 = arith.addf %15, %14 : vector<16x128xf32>
    %17 = arith.divf %15, %16 : vector<16x128xf32>
    %18 = arith.mulf %10, %17 : vector<16x128xf32>
    %c0_8 = arith.constant 0 : index
    %c0_9 = arith.constant 0 : index
    %19 = vector.load %arg18[%c0_8, %c0_9] : memref<16x64xf32, #tpu.memory_space<vmem>>, vector<16x64xf32>
    %c0_10 = arith.constant 0 : index
    %c0_11 = arith.constant 0 : index
    %20 = vector.load %arg14[%c0_10, %c0_11] : memref<128x64xf32, #tpu.memory_space<vmem>>, vector<128x64xf32>
    %cst_12 = arith.constant dense<0.000000e+00> : vector<16x64xf32>
    %21 = tpu.matmul %18, %20, %cst_12 {dimension_numbers = #tpu.dot_dimension_numbers<[1], [0], [0], [1], [0, 0, 1, 1], [], []>} : vector<16x128xf32>, vector<128x64xf32>, vector<16x64xf32> -> vector<16x64xf32>
    %22 = arith.addf %19, %21 : vector<16x64xf32>
    %c0_13 = arith.constant 0 : index
    %c0_14 = arith.constant 0 : index
    %23 = vector.load %arg18[%c0_13, %c0_14] : memref<16x64xf32, #tpu.memory_space<vmem>>, vector<16x64xf32>
    tpu.vector_store %arg18[%c0_13, %c0_14], %22 {strides = array<i32>} : memref<16x64xf32, #tpu.memory_space<vmem>>, vector<16x64xf32>,
    %c1_i32 = arith.constant 1 : i32
    %24 = arith.cmpi eq, %arg1, %c1_i32 : i32
    %25 = arith.extui %24 : i1 to i32
    %c0_i32_15 = arith.constant 0 : i32
    %26 = arith.cmpi ne, %25, %c0_i32_15 : i32
    scf.if %26 {
      %c0_16 = arith.constant 0 : index
      %c0_17 = arith.constant 0 : index
      %27 = vector.load %arg18[%c0_16, %c0_17] : memref<16x64xf32, #tpu.memory_space<vmem>>, vector<16x64xf32>
      %c0_18 = arith.constant 0 : index
      %c0_19 = arith.constant 0 : index
      %28 = vector.load %arg15[%c0_18, %c0_19] : memref<1x64xf32, #tpu.memory_space<vmem>>, vector<1x64xf32>
      %29 = vector.shape_cast %28 : vector<1x64xf32> to vector<64xf32>
      %30 = vector.shape_cast %29 : vector<64xf32> to vector<1x64xf32>
      %31 = vector.broadcast %30 : vector<1x64xf32> to vector<16x64xf32>
      %32 = arith.addf %27, %31 : vector<16x64xf32>
      %33 = vector.shape_cast %32 : vector<16x64xf32> to vector<2x8x64xf32>
      %c0_20 = arith.constant 0 : index
      %c0_21 = arith.constant 0 : index
      %c0_22 = arith.constant 0 : index
      %34 = vector.load %arg16[%c0_20, %c0_21, %c0_22] : memref<2x8x64xf32, #tpu.memory_space<vmem>>, vector<2x8x64xf32>
      tpu.vector_store %arg16[%c0_20, %c0_21, %c0_22], %33 {strides = array<i32>} : memref<2x8x64xf32, #tpu.memory_space<vmem>>, vector<2x8x64xf32>,
    } else {
    }
    return
  }
  func.func @transform_0(%arg0: i32, %arg1: i32) -> (i32, i32, i32) {
    %c0_i32 = arith.constant 0 : i32
    %c0_i32_0 = arith.constant 0 : i32
    %c0_i32_1 = arith.constant 0 : i32
    return %arg0, %c0_i32, %c0_i32_0 : i32, i32, i32
  }
  func.func @transform_1(%arg0: i32, %arg1: i32) -> (i32, i32) {
    %c0_i32 = arith.constant 0 : i32
    %c0_i32_0 = arith.constant 0 : i32
    %c0_i32_1 = arith.constant 0 : i32
    return %c0_i32, %c0_i32_0 : i32, i32
  }
  func.func @transform_2(%arg0: i32, %arg1: i32) -> (i32, i32) {
    %c0_i32 = arith.constant 0 : i32
    %c0_i32_0 = arith.constant 0 : i32
    %c0_i32_1 = arith.constant 0 : i32
    return %c0_i32, %c0_i32_0 : i32, i32
  }
  func.func @transform_3(%arg0: i32, %arg1: i32) -> (i32, i32) {
    %c0_i32 = arith.constant 0 : i32
    %c0_i32_0 = arith.constant 0 : i32
    %c0_i32_1 = arith.constant 0 : i32
    return %c0_i32, %c0_i32_0 : i32, i32
  }
  func.func @transform_4(%arg0: i32, %arg1: i32) -> (i32, i32) {
    %c0_i32 = arith.constant 0 : i32
    %c0_i32_0 = arith.constant 0 : i32
    %c0_i32_1 = arith.constant 0 : i32
    return %c0_i32, %c0_i32_0 : i32, i32
  }
  func.func @transform_5(%arg0: i32, %arg1: i32) -> (i32, i32) {
    %c0_i32 = arith.constant 0 : i32
    %c0_i32_0 = arith.constant 0 : i32
    %c0_i32_1 = arith.constant 0 : i32
    return %c0_i32, %c0_i32_0 : i32, i32
  }
  func.func @transform_6(%arg0: i32, %arg1: i32) -> (i32, i32, i32) {
    %c0_i32 = arith.constant 0 : i32
    %c0_i32_0 = arith.constant 0 : i32
    %c0_i32_1 = arith.constant 0 : i32
    %c0_i32_2 = arith.constant 0 : i32
    return %c0_i32, %c0_i32_0, %c0_i32_1 : i32, i32, i32
  }
  func.func @transform_7(%arg0: i32, %arg1: i32) -> (i32, i32, i32) {
    %c0_i32 = arith.constant 0 : i32
    %c0_i32_0 = arith.constant 0 : i32
    %c0_i32_1 = arith.constant 0 : i32
    %c0_i32_2 = arith.constant 0 : i32
    return %c0_i32, %c0_i32_0, %c0_i32_1 : i32, i32, i32
  }
  func.func @transform_8(%arg0: i32, %arg1: i32) -> (i32, i32, i32) {
    %c0_i32 = arith.constant 0 : i32
    %c0_i32_0 = arith.constant 0 : i32
    %c0_i32_1 = arith.constant 0 : i32
    %c0_i32_2 = arith.constant 0 : i32
    return %c0_i32, %c0_i32_0, %c0_i32_1 : i32, i32, i32
  }
  func.func @transform_9(%arg0: i32, %arg1: i32) -> (i32, i32) {
    %c0_i32 = arith.constant 0 : i32
    %c0_i32_0 = arith.constant 0 : i32
    %c0_i32_1 = arith.constant 0 : i32
    return %c0_i32, %c0_i32_0 : i32, i32
  }
  func.func @transform_10(%arg0: i32, %arg1: i32) -> (i32, i32) {
    %c0_i32 = arith.constant 0 : i32
    %c0_i32_0 = arith.constant 0 : i32
    return %c0_i32, %arg1 : i32, i32
  }
  func.func @transform_11(%arg0: i32, %arg1: i32) -> (i32, i32) {
    %c0_i32 = arith.constant 0 : i32
    %c0_i32_0 = arith.constant 0 : i32
    return %c0_i32, %arg1 : i32, i32
  }
  func.func @transform_12(%arg0: i32, %arg1: i32) -> (i32, i32) {
    %c0_i32 = arith.constant 0 : i32
    %c0_i32_0 = arith.constant 0 : i32
    return %arg1, %c0_i32 : i32, i32
  }
  func.func @transform_13(%arg0: i32, %arg1: i32) -> (i32, i32) {
    %c0_i32 = arith.constant 0 : i32
    %c0_i32_0 = arith.constant 0 : i32
    %c0_i32_1 = arith.constant 0 : i32
    return %c0_i32, %c0_i32_0 : i32, i32
  }
  func.func @transform_14(%arg0: i32, %arg1: i32) -> (i32, i32, i32) {
    %c0_i32 = arith.constant 0 : i32
    %c0_i32_0 = arith.constant 0 : i32
    %c0_i32_1 = arith.constant 0 : i32
    return %arg0, %c0_i32, %c0_i32_0 : i32, i32, i32
  }
}

module attributes {stable_mosaic.version = 11 : i64} {
  func.func @_block_kernel(%arg0: i32, %arg1: i32, %arg2: memref<2x8x64xf32, #tpu.memory_space<vmem>>, %arg3: memref<8x8xf32, #tpu.memory_space<vmem>>, %arg4: memref<1x64xf32, #tpu.memory_space<vmem>>, %arg5: memref<1x64xf32, #tpu.memory_space<vmem>>, %arg6: memref<1x64xf32, #tpu.memory_space<vmem>>, %arg7: memref<1x64xf32, #tpu.memory_space<vmem>>, %arg8: memref<2x64x96xf32, #tpu.memory_space<vmem>>, %arg9: memref<2x1x96xf32, #tpu.memory_space<vmem>>, %arg10: memref<2x32x64xf32, #tpu.memory_space<vmem>>, %arg11: memref<1x64xf32, #tpu.memory_space<vmem>>, %arg12: memref<64x128xf32, #tpu.memory_space<vmem>>, %arg13: memref<1x128xf32, #tpu.memory_space<vmem>>, %arg14: memref<128x64xf32, #tpu.memory_space<vmem>>, %arg15: memref<1x64xf32, #tpu.memory_space<vmem>>, %arg16: memref<2x8x64xf32, #tpu.memory_space<vmem>>, %arg17: memref<16x64xf32, #tpu.memory_space<vmem>>, %arg18: memref<16x64xf32, #tpu.memory_space<vmem>>) attributes {dimension_semantics = [#tpu.dimension_semantics<parallel>, #tpu.dimension_semantics<arbitrary>], iteration_bounds = array<i64: 2, 2>, scalar_prefetch = 0 : i64, scratch_operands = 2 : i64, tpu.core_type = #tpu.core_type<tc>, window_params = [{transform_indices = @transform_0, window_bounds = array<i64: 2, 8, 64>}, {pipeline_mode = #tpu.pipeline_mode<synchronous>, transform_indices = @transform_1, window_bounds = array<i64: 8, 8>}, {pipeline_mode = #tpu.pipeline_mode<synchronous>, transform_indices = @transform_2, window_bounds = array<i64: 1, 64>}, {pipeline_mode = #tpu.pipeline_mode<synchronous>, transform_indices = @transform_3, window_bounds = array<i64: 1, 64>}, {pipeline_mode = #tpu.pipeline_mode<synchronous>, transform_indices = @transform_4, window_bounds = array<i64: 1, 64>}, {pipeline_mode = #tpu.pipeline_mode<synchronous>, transform_indices = @transform_5, window_bounds = array<i64: 1, 64>}, {pipeline_mode = #tpu.pipeline_mode<synchronous>, transform_indices = @transform_6, window_bounds = array<i64: 2, 64, 96>}, {pipeline_mode = #tpu.pipeline_mode<synchronous>, transform_indices = @transform_7, window_bounds = array<i64: 2, 1, 96>}, {pipeline_mode = #tpu.pipeline_mode<synchronous>, transform_indices = @transform_8, window_bounds = array<i64: 2, 32, 64>}, {pipeline_mode = #tpu.pipeline_mode<synchronous>, transform_indices = @transform_9, window_bounds = array<i64: 1, 64>}, {transform_indices = @transform_10, window_bounds = array<i64: 64, 128>}, {transform_indices = @transform_11, window_bounds = array<i64: 1, 128>}, {transform_indices = @transform_12, window_bounds = array<i64: 128, 64>}, {pipeline_mode = #tpu.pipeline_mode<synchronous>, transform_indices = @transform_13, window_bounds = array<i64: 1, 64>}, {transform_indices = @transform_14, window_bounds = array<i64: 2, 8, 64>}]} {
    %c0_i32 = arith.constant 0 : i32
    %0 = arith.cmpi eq, %arg1, %c0_i32 : i32
    %1 = arith.extui %0 : i1 to i32
    %c0_i32_0 = arith.constant 0 : i32
    %2 = arith.cmpi ne, %1, %c0_i32_0 : i32
    scf.if %2 {
      %c0_16 = arith.constant 0 : index
      %c0_17 = arith.constant 0 : index
      %c0_18 = arith.constant 0 : index
      %27 = vector.load %arg2[%c0_16, %c0_17, %c0_18] : memref<2x8x64xf32, #tpu.memory_space<vmem>>, vector<2x8x64xf32>
      %28 = vector.shape_cast %27 : vector<2x8x64xf32> to vector<16x64xf32>
      %c0_19 = arith.constant 0 : index
      %c0_20 = arith.constant 0 : index
      %29 = vector.load %arg4[%c0_19, %c0_20] : memref<1x64xf32, #tpu.memory_space<vmem>>, vector<1x64xf32>
      %30 = vector.shape_cast %29 : vector<1x64xf32> to vector<64xf32>
      %c0_21 = arith.constant 0 : index
      %c0_22 = arith.constant 0 : index
      %31 = vector.load %arg5[%c0_21, %c0_22] : memref<1x64xf32, #tpu.memory_space<vmem>>, vector<1x64xf32>
      %32 = vector.shape_cast %31 : vector<1x64xf32> to vector<64xf32>
      %cst_23 = arith.constant dense<0.000000e+00> : vector<16xf32>
      %33 = vector.multi_reduction <add>, %28, %cst_23 [1] : vector<16x64xf32> to vector<16xf32>
      %34 = vector.shape_cast %33 : vector<16xf32> to vector<16x1xf32>
      %cst_24 = arith.constant 6.400000e+01 : f32
      %35 = vector.broadcast %cst_24 : f32 to vector<16x1xf32>
      %36 = arith.divf %34, %35 : vector<16x1xf32>
      %37 = vector.broadcast %36 : vector<16x1xf32> to vector<16x64xf32>
      %38 = arith.subf %28, %37 : vector<16x64xf32>
      %39 = arith.mulf %38, %38 : vector<16x64xf32>
      %cst_25 = arith.constant dense<0.000000e+00> : vector<16xf32>
      %40 = vector.multi_reduction <add>, %39, %cst_25 [1] : vector<16x64xf32> to vector<16xf32>
      %41 = vector.shape_cast %40 : vector<16xf32> to vector<16x1xf32>
      %cst_26 = arith.constant 6.400000e+01 : f32
      %42 = vector.broadcast %cst_26 : f32 to vector<16x1xf32>
      %43 = arith.divf %41, %42 : vector<16x1xf32>
      %cst_27 = arith.constant 9.99999974E-6 : f32
      %44 = vector.broadcast %cst_27 : f32 to vector<16x1xf32>
      %45 = arith.addf %43, %44 : vector<16x1xf32>
      %46 = math.rsqrt %45 : vector<16x1xf32>
      %47 = vector.broadcast %46 : vector<16x1xf32> to vector<16x64xf32>
      %48 = arith.mulf %38, %47 : vector<16x64xf32>
      %49 = vector.shape_cast %30 : vector<64xf32> to vector<1x64xf32>
      %50 = vector.broadcast %49 : vector<1x64xf32> to vector<16x64xf32>
      %51 = arith.mulf %48, %50 : vector<16x64xf32>
      %52 = vector.shape_cast %32 : vector<64xf32> to vector<1x64xf32>
      %53 = vector.broadcast %52 : vector<1x64xf32> to vector<16x64xf32>
      %54 = arith.addf %51, %53 : vector<16x64xf32>
      %c0_28 = arith.constant 0 : index
      %c0_29 = arith.constant 0 : index
      %55 = vector.load %arg3[%c0_28, %c0_29] : memref<8x8xf32, #tpu.memory_space<vmem>>, vector<8x8xf32>
      %56 = vector.shape_cast %55 : vector<8x8xf32> to vector<1x8x8xf32>
      %57 = vector.shape_cast %56 : vector<1x8x8xf32> to vector<1x8x8xf32>
      %58 = vector.broadcast %57 : vector<1x8x8xf32> to vector<2x8x8xf32>
      %c0_30 = arith.constant 0 : index
      %c0_31 = arith.constant 0 : index
      %59 = vector.load %arg11[%c0_30, %c0_31] : memref<1x64xf32, #tpu.memory_space<vmem>>, vector<1x64xf32>
      %60 = vector.shape_cast %59 : vector<1x64xf32> to vector<64xf32>
      %61 = vector.shape_cast %60 : vector<64xf32> to vector<1x64xf32>
      %62 = vector.broadcast %61 : vector<1x64xf32> to vector<16x64xf32>
      %63 = arith.addf %28, %62 : vector<16x64xf32>
      %c0_32 = arith.constant 0 : index
      %c0_33 = arith.constant 0 : index
      %64 = vector.load %arg18[%c0_32, %c0_33] : memref<16x64xf32, #tpu.memory_space<vmem>>, vector<16x64xf32>
      tpu.vector_store %arg18[%c0_32, %c0_33], %63 {strides = array<i32>} : memref<16x64xf32, #tpu.memory_space<vmem>>, vector<16x64xf32>,
      %c0_i32_34 = arith.constant 0 : i32
      %c2_i32 = arith.constant 2 : i32
      %65 = arith.addi %c0_i32_34, %c2_i32 : i32
      %c1_i32_35 = arith.constant 1 : i32
      scf.for %arg19 = %c0_i32_34 to %65 step %c1_i32_35  : i32 {
        %94 = arith.index_cast %arg19 : i32 to index
        %c0_50 = arith.constant 0 : index
        %c0_51 = arith.constant 0 : index
        %95 = vector.load %arg8[%94, %c0_50, %c0_51] : memref<2x64x96xf32, #tpu.memory_space<vmem>>, vector<1x64x96xf32>
        %96 = vector.shape_cast %95 : vector<1x64x96xf32> to vector<64x96xf32>
        %cst_52 = arith.constant dense<0.000000e+00> : vector<16x96xf32>
        %97 = tpu.matmul %54, %96, %cst_52 {dimension_numbers = #tpu.dot_dimension_numbers<[1], [0], [0], [1], [0, 0, 1, 1], [], []>} : vector<16x64xf32>, vector<64x96xf32>, vector<16x96xf32> -> vector<16x96xf32>
        %98 = arith.index_cast %arg19 : i32 to index
        %c0_53 = arith.constant 0 : index
        %c0_54 = arith.constant 0 : index
        %99 = vector.load %arg9[%98, %c0_53, %c0_54] : memref<2x1x96xf32, #tpu.memory_space<vmem>>, vector<1x1x96xf32>
        %100 = vector.shape_cast %99 : vector<1x1x96xf32> to vector<1x96xf32>
        %101 = vector.broadcast %100 : vector<1x96xf32> to vector<16x96xf32>
        %102 = arith.addf %97, %101 : vector<16x96xf32>
        %103 = vector.extract_strided_slice %102 {offsets = [0, 0], sizes = [16, 16], strides = [1, 1]} : vector<16x96xf32> to vector<16x16xf32>
        %104 = vector.shape_cast %103 : vector<16x16xf32> to vector<2x8x16xf32>
        %105 = vector.extract_strided_slice %102 {offsets = [0, 32], sizes = [16, 16], strides = [1, 1]} : vector<16x96xf32> to vector<16x16xf32>
        %106 = vector.shape_cast %105 : vector<16x16xf32> to vector<2x8x16xf32>
        %107 = vector.extract_strided_slice %102 {offsets = [0, 64], sizes = [16, 16], strides = [1, 1]} : vector<16x96xf32> to vector<16x16xf32>
        %108 = vector.shape_cast %107 : vector<16x16xf32> to vector<2x8x16xf32>
        "tpu.trace_start"() <{level = 10 : i32, message = "bqd,bkd->bqk"}> : () -> ()
        %cst_55 = arith.constant dense<0.000000e+00> : vector<2x8x8xf32>
        %109 = tpu.matmul %104, %106, %cst_55 {dimension_numbers = #tpu.dot_dimension_numbers<[2], [2], [1], [1], [0, 0, 0, 1, 1, 1], [0], [0]>} : vector<2x8x16xf32>, vector<2x8x16xf32>, vector<2x8x8xf32> -> vector<2x8x8xf32>
        "tpu.trace_stop"() : () -> ()
        %110 = arith.addf %109, %58 : vector<2x8x8xf32>
        %cst_56 = arith.constant dense<0xFF800000> : vector<2x8xf32>
        %111 = vector.multi_reduction <maximumf>, %110, %cst_56 [2] : vector<2x8x8xf32> to vector<2x8xf32>
        %112 = vector.shape_cast %111 : vector<2x8xf32> to vector<2x8x1xf32>
        %113 = vector.broadcast %112 : vector<2x8x1xf32> to vector<2x8x8xf32>
        %114 = arith.subf %110, %113 : vector<2x8x8xf32>
        %115 = math.exp %114 : vector<2x8x8xf32>
        %cst_57 = arith.constant dense<0.000000e+00> : vector<2x8xf32>
        %116 = vector.multi_reduction <add>, %115, %cst_57 [2] : vector<2x8x8xf32> to vector<2x8xf32>
        %117 = vector.shape_cast %116 : vector<2x8xf32> to vector<2x8x1xf32>
        "tpu.trace_start"() <{level = 10 : i32, message = "bqk,bkd->bqd"}> : () -> ()
        %cst_58 = arith.constant dense<0.000000e+00> : vector<2x8x16xf32>
        %118 = tpu.matmul %115, %108, %cst_58 {dimension_numbers = #tpu.dot_dimension_numbers<[2], [1], [1], [2], [0, 0, 0, 1, 1, 2], [0], [0]>} : vector<2x8x8xf32>, vector<2x8x16xf32>, vector<2x8x16xf32> -> vector<2x8x16xf32>
        "tpu.trace_stop"() : () -> ()
        %119 = tpu.reciprocal %117 {approx = true} : vector<2x8x1xf32> -> vector<2x8x1xf32>
        %120 = vector.broadcast %119 : vector<2x8x1xf32> to vector<2x8x16xf32>
        %121 = arith.mulf %118, %120 : vector<2x8x16xf32>
        %122 = vector.shape_cast %121 : vector<2x8x16xf32> to vector<16x16xf32>
        %123 = vector.extract_strided_slice %102 {offsets = [0, 16], sizes = [16, 16], strides = [1, 1]} : vector<16x96xf32> to vector<16x16xf32>
        %124 = vector.shape_cast %123 : vector<16x16xf32> to vector<2x8x16xf32>
        %125 = vector.extract_strided_slice %102 {offsets = [0, 48], sizes = [16, 16], strides = [1, 1]} : vector<16x96xf32> to vector<16x16xf32>
        %126 = vector.shape_cast %125 : vector<16x16xf32> to vector<2x8x16xf32>
        %127 = vector.extract_strided_slice %102 {offsets = [0, 80], sizes = [16, 16], strides = [1, 1]} : vector<16x96xf32> to vector<16x16xf32>
        %128 = vector.shape_cast %127 : vector<16x16xf32> to vector<2x8x16xf32>
        "tpu.trace_start"() <{level = 10 : i32, message = "bqd,bkd->bqk"}> : () -> ()
        %cst_59 = arith.constant dense<0.000000e+00> : vector<2x8x8xf32>
        %129 = tpu.matmul %124, %126, %cst_59 {dimension_numbers = #tpu.dot_dimension_numbers<[2], [2], [1], [1], [0, 0, 0, 1, 1, 1], [0], [0]>} : vector<2x8x16xf32>, vector<2x8x16xf32>, vector<2x8x8xf32> -> vector<2x8x8xf32>
        "tpu.trace_stop"() : () -> ()
        %130 = arith.addf %129, %58 : vector<2x8x8xf32>
        %cst_60 = arith.constant dense<0xFF800000> : vector<2x8xf32>
        %131 = vector.multi_reduction <maximumf>, %130, %cst_60 [2] : vector<2x8x8xf32> to vector<2x8xf32>
        %132 = vector.shape_cast %131 : vector<2x8xf32> to vector<2x8x1xf32>
        %133 = vector.broadcast %132 : vector<2x8x1xf32> to vector<2x8x8xf32>
        %134 = arith.subf %130, %133 : vector<2x8x8xf32>
        %135 = math.exp %134 : vector<2x8x8xf32>
        %cst_61 = arith.constant dense<0.000000e+00> : vector<2x8xf32>
        %136 = vector.multi_reduction <add>, %135, %cst_61 [2] : vector<2x8x8xf32> to vector<2x8xf32>
        %137 = vector.shape_cast %136 : vector<2x8xf32> to vector<2x8x1xf32>
        "tpu.trace_start"() <{level = 10 : i32, message = "bqk,bkd->bqd"}> : () -> ()
        %cst_62 = arith.constant dense<0.000000e+00> : vector<2x8x16xf32>
        %138 = tpu.matmul %135, %128, %cst_62 {dimension_numbers = #tpu.dot_dimension_numbers<[2], [1], [1], [2], [0, 0, 0, 1, 1, 2], [0], [0]>} : vector<2x8x8xf32>, vector<2x8x16xf32>, vector<2x8x16xf32> -> vector<2x8x16xf32>
        "tpu.trace_stop"() : () -> ()
        %139 = tpu.reciprocal %137 {approx = true} : vector<2x8x1xf32> -> vector<2x8x1xf32>
        %140 = vector.broadcast %139 : vector<2x8x1xf32> to vector<2x8x16xf32>
        %141 = arith.mulf %138, %140 : vector<2x8x16xf32>
        %142 = vector.shape_cast %141 : vector<2x8x16xf32> to vector<16x16xf32>
        %143 = tpu.concatenate %122, %142 in 1 : vector<16x16xf32>, vector<16x16xf32> -> vector<16x32xf32>
        %c0_63 = arith.constant 0 : index
        %c0_64 = arith.constant 0 : index
        %144 = vector.load %arg18[%c0_63, %c0_64] : memref<16x64xf32, #tpu.memory_space<vmem>>, vector<16x64xf32>
        %145 = arith.index_cast %arg19 : i32 to index
        %c0_65 = arith.constant 0 : index
        %c0_66 = arith.constant 0 : index
        %146 = vector.load %arg10[%145, %c0_65, %c0_66] : memref<2x32x64xf32, #tpu.memory_space<vmem>>, vector<1x32x64xf32>
        %147 = vector.shape_cast %146 : vector<1x32x64xf32> to vector<32x64xf32>
        %cst_67 = arith.constant dense<0.000000e+00> : vector<16x64xf32>
        %148 = tpu.matmul %143, %147, %cst_67 {dimension_numbers = #tpu.dot_dimension_numbers<[1], [0], [0], [1], [0, 0, 1, 1], [], []>} : vector<16x32xf32>, vector<32x64xf32>, vector<16x64xf32> -> vector<16x64xf32>
        %149 = arith.addf %144, %148 : vector<16x64xf32>
        %c0_68 = arith.constant 0 : index
        %c0_69 = arith.constant 0 : index
        %150 = vector.load %arg18[%c0_68, %c0_69] : memref<16x64xf32, #tpu.memory_space<vmem>>, vector<16x64xf32>
        tpu.vector_store %arg18[%c0_68, %c0_69], %149 {strides = array<i32>} : memref<16x64xf32, #tpu.memory_space<vmem>>, vector<16x64xf32>,
      }
      %c2_i32_36 = arith.constant 2 : i32
      %c0_37 = arith.constant 0 : index
      %c0_38 = arith.constant 0 : index
      %66 = vector.load %arg18[%c0_37, %c0_38] : memref<16x64xf32, #tpu.memory_space<vmem>>, vector<16x64xf32>
      %c0_39 = arith.constant 0 : index
      %c0_40 = arith.constant 0 : index
      %67 = vector.load %arg6[%c0_39, %c0_40] : memref<1x64xf32, #tpu.memory_space<vmem>>, vector<1x64xf32>
      %68 = vector.shape_cast %67 : vector<1x64xf32> to vector<64xf32>
      %c0_41 = arith.constant 0 : index
      %c0_42 = arith.constant 0 : index
      %69 = vector.load %arg7[%c0_41, %c0_42] : memref<1x64xf32, #tpu.memory_space<vmem>>, vector<1x64xf32>
      %70 = vector.shape_cast %69 : vector<1x64xf32> to vector<64xf32>
      %cst_43 = arith.constant dense<0.000000e+00> : vector<16xf32>
      %71 = vector.multi_reduction <add>, %66, %cst_43 [1] : vector<16x64xf32> to vector<16xf32>
      %72 = vector.shape_cast %71 : vector<16xf32> to vector<16x1xf32>
      %cst_44 = arith.constant 6.400000e+01 : f32
      %73 = vector.broadcast %cst_44 : f32 to vector<16x1xf32>
      %74 = arith.divf %72, %73 : vector<16x1xf32>
      %75 = vector.broadcast %74 : vector<16x1xf32> to vector<16x64xf32>
      %76 = arith.subf %66, %75 : vector<16x64xf32>
      %77 = arith.mulf %76, %76 : vector<16x64xf32>
      %cst_45 = arith.constant dense<0.000000e+00> : vector<16xf32>
      %78 = vector.multi_reduction <add>, %77, %cst_45 [1] : vector<16x64xf32> to vector<16xf32>
      %79 = vector.shape_cast %78 : vector<16xf32> to vector<16x1xf32>
      %cst_46 = arith.constant 6.400000e+01 : f32
      %80 = vector.broadcast %cst_46 : f32 to vector<16x1xf32>
      %81 = arith.divf %79, %80 : vector<16x1xf32>
      %cst_47 = arith.constant 9.99999974E-6 : f32
      %82 = vector.broadcast %cst_47 : f32 to vector<16x1xf32>
      %83 = arith.addf %81, %82 : vector<16x1xf32>
      %84 = math.rsqrt %83 : vector<16x1xf32>
      %85 = vector.broadcast %84 : vector<16x1xf32> to vector<16x64xf32>
      %86 = arith.mulf %76, %85 : vector<16x64xf32>
      %87 = vector.shape_cast %68 : vector<64xf32> to vector<1x64xf32>
      %88 = vector.broadcast %87 : vector<1x64xf32> to vector<16x64xf32>
      %89 = arith.mulf %86, %88 : vector<16x64xf32>
      %90 = vector.shape_cast %70 : vector<64xf32> to vector<1x64xf32>
      %91 = vector.broadcast %90 : vector<1x64xf32> to vector<16x64xf32>
      %92 = arith.addf %89, %91 : vector<16x64xf32>
      %c0_48 = arith.constant 0 : index
      %c0_49 = arith.constant 0 : index
      %93 = vector.load %arg17[%c0_48, %c0_49] : memref<16x64xf32, #tpu.memory_space<vmem>>, vector<16x64xf32>
      tpu.vector_store %arg17[%c0_48, %c0_49], %92 {strides = array<i32>} : memref<16x64xf32, #tpu.memory_space<vmem>>, vector<16x64xf32>,
    } else {
    }
    %c0 = arith.constant 0 : index
    %c0_1 = arith.constant 0 : index
    %3 = vector.load %arg17[%c0, %c0_1] : memref<16x64xf32, #tpu.memory_space<vmem>>, vector<16x64xf32>
    %c0_2 = arith.constant 0 : index
    %c0_3 = arith.constant 0 : index
    %4 = vector.load %arg12[%c0_2, %c0_3] : memref<64x128xf32, #tpu.memory_space<vmem>>, vector<64x128xf32>
    %cst = arith.constant dense<0.000000e+00> : vector<16x128xf32>
    %5 = tpu.matmul %3, %4, %cst {dimension_numbers = #tpu.dot_dimension_numbers<[1], [0], [0], [1], [0, 0, 1, 1], [], []>} : vector<16x64xf32>, vector<64x128xf32>, vector<16x128xf32> -> vector<16x128xf32>
    %c0_4 = arith.constant 0 : index
    %c0_5 = arith.constant 0 : index
    %6 = vector.load %arg13[%c0_4, %c0_5] : memref<1x128xf32, #tpu.memory_space<vmem>>, vector<1x128xf32>
    %7 = vector.shape_cast %6 : vector<1x128xf32> to vector<128xf32>
    %8 = vector.shape_cast %7 : vector<128xf32> to vector<1x128xf32>
    %9 = vector.broadcast %8 : vector<1x128xf32> to vector<16x128xf32>
    %10 = arith.addf %5, %9 : vector<16x128xf32>
    %cst_6 = arith.constant 1.702000e+00 : f32
    %11 = vector.broadcast %cst_6 : f32 to vector<16x128xf32>
    %12 = arith.mulf %11, %10 : vector<16x128xf32>
    %13 = arith.negf %12 : vector<16x128xf32>
    %14 = math.exp %13 : vector<16x128xf32>
    %cst_7 = arith.constant 1.000000e+00 : f32
    %15 = vector.broadcast %cst_7 : f32 to vector<16x128xf32>
    %16 = arith.addf %15, %14 : vector<16x128xf32>
    %17 = arith.divf %15, %16 : vector<16x128xf32>
    %18 = arith.mulf %10, %17 : vector<16x128xf32>
    %c0_8 = arith.constant 0 : index
    %c0_9 = arith.constant 0 : index
    %19 = vector.load %arg18[%c0_8, %c0_9] : memref<16x64xf32, #tpu.memory_space<vmem>>, vector<16x64xf32>
    %c0_10 = arith.constant 0 : index
    %c0_11 = arith.constant 0 : index
    %20 = vector.load %arg14[%c0_10, %c0_11] : memref<128x64xf32, #tpu.memory_space<vmem>>, vector<128x64xf32>
    %cst_12 = arith.constant dense<0.000000e+00> : vector<16x64xf32>
    %21 = tpu.matmul %18, %20, %cst_12 {dimension_numbers = #tpu.dot_dimension_numbers<[1], [0], [0], [1], [0, 0, 1, 1], [], []>} : vector<16x128xf32>, vector<128x64xf32>, vector<16x64xf32> -> vector<16x64xf32>
    %22 = arith.addf %19, %21 : vector<16x64xf32>
    %c0_13 = arith.constant 0 : index
    %c0_14 = arith.constant 0 : index
    %23 = vector.load %arg18[%c0_13, %c0_14] : memref<16x64xf32, #tpu.memory_space<vmem>>, vector<16x64xf32>
    tpu.vector_store %arg18[%c0_13, %c0_14], %22 {strides = array<i32>} : memref<16x64xf32, #tpu.memory_space<vmem>>, vector<16x64xf32>,
    %c1_i32 = arith.constant 1 : i32
    %24 = arith.cmpi eq, %arg1, %c1_i32 : i32
    %25 = arith.extui %24 : i1 to i32
    %c0_i32_15 = arith.constant 0 : i32
    %26 = arith.cmpi ne, %25, %c0_i32_15 : i32
    scf.if %26 {
      %c0_16 = arith.constant 0 : index
      %c0_17 = arith.constant 0 : index
      %27 = vector.load %arg18[%c0_16, %c0_17] : memref<16x64xf32, #tpu.memory_space<vmem>>, vector<16x64xf32>
      %c0_18 = arith.constant 0 : index
      %c0_19 = arith.constant 0 : index
      %28 = vector.load %arg15[%c0_18, %c0_19] : memref<1x64xf32, #tpu.memory_space<vmem>>, vector<1x64xf32>
      %29 = vector.shape_cast %28 : vector<1x64xf32> to vector<64xf32>
      %30 = vector.shape_cast %29 : vector<64xf32> to vector<1x64xf32>
      %31 = vector.broadcast %30 : vector<1x64xf32> to vector<16x64xf32>
      %32 = arith.addf %27, %31 : vector<16x64xf32>
      %33 = vector.shape_cast %32 : vector<16x64xf32> to vector<2x8x64xf32>
      %c0_20 = arith.constant 0 : index
      %c0_21 = arith.constant 0 : index
      %c0_22 = arith.constant 0 : index
      %34 = vector.load %arg16[%c0_20, %c0_21, %c0_22] : memref<2x8x64xf32, #tpu.memory_space<vmem>>, vector<2x8x64xf32>
      tpu.vector_store %arg16[%c0_20, %c0_21, %c0_22], %33 {strides = array<i32>} : memref<2x8x64xf32, #tpu.memory_space<vmem>>, vector<2x8x64xf32>,
    } else {
    }
    return
  }
  func.func @transform_0(%arg0: i32, %arg1: i32) -> (i32, i32, i32) {
    %c0_i32 = arith.constant 0 : i32
    %c0_i32_0 = arith.constant 0 : i32
    %c0_i32_1 = arith.constant 0 : i32
    return %arg0, %c0_i32, %c0_i32_0 : i32, i32, i32
  }
  func.func @transform_1(%arg0: i32, %arg1: i32) -> (i32, i32) {
    %c0_i32 = arith.constant 0 : i32
    %c0_i32_0 = arith.constant 0 : i32
    %c0_i32_1 = arith.constant 0 : i32
    return %c0_i32, %c0_i32_0 : i32, i32
  }
  func.func @transform_2(%arg0: i32, %arg1: i32) -> (i32, i32) {
    %c0_i32 = arith.constant 0 : i32
    %c0_i32_0 = arith.constant 0 : i32
    %c0_i32_1 = arith.constant 0 : i32
    return %c0_i32, %c0_i32_0 : i32, i32
  }
  func.func @transform_3(%arg0: i32, %arg1: i32) -> (i32, i32) {
    %c0_i32 = arith.constant 0 : i32
    %c0_i32_0 = arith.constant 0 : i32
    %c0_i32_1 = arith.constant 0 : i32
    return %c0_i32, %c0_i32_0 : i32, i32
  }
  func.func @transform_4(%arg0: i32, %arg1: i32) -> (i32, i32) {
    %c0_i32 = arith.constant 0 : i32
    %c0_i32_0 = arith.constant 0 : i32
    %c0_i32_1 = arith.constant 0 : i32
    return %c0_i32, %c0_i32_0 : i32, i32
  }
  func.func @transform_5(%arg0: i32, %arg1: i32) -> (i32, i32) {
    %c0_i32 = arith.constant 0 : i32
    %c0_i32_0 = arith.constant 0 : i32
    %c0_i32_1 = arith.constant 0 : i32
    return %c0_i32, %c0_i32_0 : i32, i32
  }
  func.func @transform_6(%arg0: i32, %arg1: i32) -> (i32, i32, i32) {
    %c0_i32 = arith.constant 0 : i32
    %c0_i32_0 = arith.constant 0 : i32
    %c0_i32_1 = arith.constant 0 : i32
    %c0_i32_2 = arith.constant 0 : i32
    return %c0_i32, %c0_i32_0, %c0_i32_1 : i32, i32, i32
  }
  func.func @transform_7(%arg0: i32, %arg1: i32) -> (i32, i32, i32) {
    %c0_i32 = arith.constant 0 : i32
    %c0_i32_0 = arith.constant 0 : i32
    %c0_i32_1 = arith.constant 0 : i32
    %c0_i32_2 = arith.constant 0 : i32
    return %c0_i32, %c0_i32_0, %c0_i32_1 : i32, i32, i32
  }
  func.func @transform_8(%arg0: i32, %arg1: i32) -> (i32, i32, i32) {
    %c0_i32 = arith.constant 0 : i32
    %c0_i32_0 = arith.constant 0 : i32
    %c0_i32_1 = arith.constant 0 : i32
    %c0_i32_2 = arith.constant 0 : i32
    return %c0_i32, %c0_i32_0, %c0_i32_1 : i32, i32, i32
  }
  func.func @transform_9(%arg0: i32, %arg1: i32) -> (i32, i32) {
    %c0_i32 = arith.constant 0 : i32
    %c0_i32_0 = arith.constant 0 : i32
    %c0_i32_1 = arith.constant 0 : i32
    return %c0_i32, %c0_i32_0 : i32, i32
  }
  func.func @transform_10(%arg0: i32, %arg1: i32) -> (i32, i32) {
    %c0_i32 = arith.constant 0 : i32
    %c0_i32_0 = arith.constant 0 : i32
    return %c0_i32, %arg1 : i32, i32
  }
  func.func @transform_11(%arg0: i32, %arg1: i32) -> (i32, i32) {
    %c0_i32 = arith.constant 0 : i32
    %c0_i32_0 = arith.constant 0 : i32
    return %c0_i32, %arg1 : i32, i32
  }
  func.func @transform_12(%arg0: i32, %arg1: i32) -> (i32, i32) {
    %c0_i32 = arith.constant 0 : i32
    %c0_i32_0 = arith.constant 0 : i32
    return %arg1, %c0_i32 : i32, i32
  }
  func.func @transform_13(%arg0: i32, %arg1: i32) -> (i32, i32) {
    %c0_i32 = arith.constant 0 : i32
    %c0_i32_0 = arith.constant 0 : i32
    %c0_i32_1 = arith.constant 0 : i32
    return %c0_i32, %c0_i32_0 : i32, i32
  }
  func.func @transform_14(%arg0: i32, %arg1: i32) -> (i32, i32, i32) {
    %c0_i32 = arith.constant 0 : i32
    %c0_i32_0 = arith.constant 0 : i32
    %c0_i32_1 = arith.constant 0 : i32
    return %arg0, %c0_i32, %c0_i32_0 : i32, i32, i32
  }
}

</mosaic_0001>

<bundles_post_ra>
// kernel: tpu_custom_call.1
= control target key start
LH: loop header
LB: loop body
LE: loop exit
PB: predicated region body
PF: predicated region fallthrough
CT: control target
= control target key end

     0   :  { %s2968_s0 = inlined_call_operand.vmem [shape: f32[4,8,64], index: 0, kind: input, shape index: {}]   ;;  %s2969_s1 = inlined_call_operand.vmem [shape: f32[8,8], index: 1, kind: input, shape index: {}]   ;;  %s2970_s2 = inlined_call_operand.vmem [shape: f32[1,64], index: 2, kind: input, shape index: {}]   ;;  %s2971_s3 = inlined_call_operand.vmem [shape: f32[1,64], index: 3, kind: input, shape index: {}]   ;;  %s2972_s4 = inlined_call_operand.vmem [shape: f32[1,64], index: 4, kind: input, shape index: {}]   ;;  %s2973_s5 = inlined_call_operand.vmem [shape: f32[1,64], index: 5, kind: input, shape index: {}]   ;;  %s2974_s6 = inlined_call_operand.vmem [shape: f32[2,64,96], index: 6, kind: input, shape index: {}]   ;;  %s2975_s7 = inlined_call_operand.vmem [shape: f32[2,1,96], index: 7, kind: input, shape index: {}]   ;;  %s2976_s8 = inlined_call_operand.vmem [shape: f32[2,32,64], index: 8, kind: input, shape index: {}]   ;;  %s2977_s9 = inlined_call_operand.vmem [shape: f32[1,64], index: 9, kind: input, shape index: {}]   ;;  %s2978_s10 = inlined_call_operand.vmem [shape: f32[64,256], index: 10, kind: input, shape index: {}]   ;;  %s2979_s11 = inlined_call_operand.vmem [shape: f32[1,256], index: 11, kind: input, shape index: {}]   ;;  %s2980_s12 = inlined_call_operand.vmem [shape: f32[256,64], index: 12, kind: input, shape index: {}]   ;;  %s2981_s13 = inlined_call_operand.vmem [shape: f32[1,64], index: 13, kind: input, shape index: {}]   ;;  %s2982_s14 = inlined_call_operand.hbm [shape: f32[4,8,64], index: 14, kind: output, shape index: {}]  }
   0x1   :  { %2995 = sst [smem:[#allocation19_spill]] %s2972_s4 }
   0x2   :  { %2996 = sst [smem:[#allocation20_spill]] %s2973_s5 }
   0x3   :  { %2997 = sst [smem:[#allocation21_spill]] %s2976_s8 }
   0x4   :  { %2998 = sst [smem:[#allocation22_spill]] %s2978_s10 }
   0x5   :  { %2999 = sst [smem:[#allocation23_spill]] %s2981_s13 }
   0x6   :  { %3000 = sst [smem:[#allocation24_spill]] %s2982_s14 }
   0x7   :  { %19 = vsyncpa [#allocation6], 0 }
   0x8   :  { %21 = vsyncpa [#allocation6 + $0x1], 0  ;;  %s2595_s29 = smov 0   ;;  %s2597_s30 = smov 0  }
   0x9   :  { %s2599_s15 = smov 0   ;;  %s2601_s16 = smov 0  }
   0xa   :  { %s2603_s17 = smov 0   ;;  %s2605_s18 = smov 0  }
   0xb   :  { %s2607_s19 = smov 0   ;;  %s2609_s20 = smov 0  }
   0xc   :  { %s2611_s21 = smov 0   ;;  %s2613_s22 = smov 0  }
   0xd LB: > { %3001 = sst [smem:[#allocation8_spill]] %s2467_s29  ;;  %s1945_s23 = sadd.s32 4294967295, %s2503_s22   ;;  %s2503_s22 = sphi %s2613_s22, %s27_s22   ;;  %s2499_s21 = sphi %s2611_s21, %s3033_s21   ;;  %s2495_s20 = sphi %s2609_s20, %s3032_s20   ;;  %s2491_s19 = sphi %s2607_s19, %s3036_s19   ;;  %s2487_s18 = sphi %s2605_s18, %s3030_s18   ;;  %s2483_s17 = sphi %s2603_s17, %s3029_s17   ;;  %s2479_s16 = sphi %s2601_s16, %s3028_s16   ;;  %s2475_s15 = sphi %s2599_s15, %s3027_s15   ;;  %s2471_s30 = sphi %s2597_s30, %s3035_s30   ;;  %s2467_s29 = sphi %s2595_s29, %s3034_s29  }
   0xe   : > { %3002 = sst [smem:[#allocation9_spill]] %s2475_s15  ;;  %s1946_s24 = sadd.s32 4294967294, %s2503_s22  }
   0xf   : > { %3003 = sst [smem:[#allocation10_spill]] %s2483_s17  ;;  %s36_s25 = sadd.s32 1, %s2495_s20 }
  0x10   : > { %3004 = sst [smem:[#allocation11_spill]] %s2495_s20  ;;  %s39_s26 = sadd.s32 1, %s2499_s21 }
  0x11   : > { %3005 = sst [smem:[#allocation12_spill]] %s2499_s21  ;;  %p37_p0 = scmp.ge.s32.totalorder %s36_s25, 2 }
  0x12   : > { %3006 = sst [smem:[#allocation13_spill]] %s2503_s22  ;;  %s261_s27 = sadd.s32 1, %s2483_s17 }
  0x13   : > { %p268_p1 = scmp.ne.s32.totalorder %s2483_s17, %s2479_s16  ;;  %p269_p2 = scmp.eq.s32.totalorder %s2503_s22, 0 }
  0x14   : > { %s3038_s25 = smov (%p37_p0, %s36_s25), 0  ;;  %s3040_s26 = smov (!%p37_p0, %s39_s26), %s2499_s21 }
  0x15   : > { %3007 = sst [smem:[#allocation14_spill]] %s3038_s25  ;;  %s258_s28 = ssub.s32 %s2495_s20, %s3038_s25 }
  0x16   : > { %p2658_p3 = por %p269_p2, %p268_p1  ;;  %p41_p4 = scmp.ge.s32.totalorder %s3040_s26, 2 }
  0x17   : > { %p259_p5 = scmp.eq.s32.totalorder %s258_s28, 0  ;;  %s360_s13 = sadd.s32 1, %s2475_s15 }
  0x18   : > { %p370_p6 = scmp.ne.s32.totalorder %s2475_s15, %s2471_s30  ;;  %s3042_s26 = smov (%p41_p4, %s3040_s26), 0 }
  0x19   : > { %3009 = sst [smem:[#allocation15_spill]] %s3042_s26  ;;  %s357_s4 = ssub.s32 %s2499_s21, %s3042_s26 }
  0x1a   : > { %s2668_s5 = scalar_select %p259_p5, %s2483_s17, %s261_s27  }
  0x1b   : > { %p371_p7 = scmp.eq.s32.totalorder %s1945_s23, 3  ;;  %p358_p8 = scmp.eq.s32.totalorder %s357_s4, 0 }
  0x1c   : > { %3010 = sst [smem:[#allocation16_spill]] %s2668_s5  ;;  %p376_p9 = scmp.ne.s32.totalorder %s2471_s30, %s2467_s29 }
  0x1d   : > { %p2674_p10 = por %p371_p7, %p370_p6  ;;  %p377_p11 = scmp.eq.s32.totalorder %s1946_s24, 3 }
  0x1e   : > { %s2679_s25 = scalar_select %p358_p8, %s2475_s15, %s360_s13  }
  0x1f   : > { %p2681_p12 = por %p377_p11, %p376_p9  ;;  %p1948_p13 = scmp.ge.s32.totalorder %s2503_s22, 4 }
  0x20   : > { %3012 = sst [smem:[#allocation17_spill]] %s2679_s25 }
  0x21   : > { %s3013_s28 = scalar_select %p2681_p12, 1, 0 }
  0x22   : > { %423 = sbr.rel (%p1948_p13) target bundleno = 55 (0x37), region = 56 }
  0x23   : > { %3014 = sst [smem:[#allocation18_spill]] %s3013_s28 }
  0x29   : > { %435 = sbr.rel (!%p2658_p3) target bundleno = 55 (0x37), region = 64  ;;  %s437_s4 = sand.u32 (%p2658_p3), 1, %s2483_s17  }
  0x2a   : > { %s1950_s23 = sshll.u32 (%p2658_p3), %s2495_s20, 3  ;;  %s1949_s27 = sshll.u32 (%p2658_p3), %s437_s4, 6 }
  0x2b   : > { %s3015_s10 = sld [smem:[#allocation22_spill]] (%p2658_p3)  ;;  %s439_s24 = scalar_lea.vmem (%p2658_p3), [#allocation4], %s1949_s27 }
  0x31   : > { %s441_s13 = scalar_lea.vmem %s3015_s10, %s1950_s23 }
  0x32   : > { %v483_v0 = vld [vmem:[%s441_s13] sm:$0xff]  ;;  %v485_v1 = vld [vmem:[%s441_s13 + $0x10] sm:$0xff] }
  0x33   : > { %v487_v2 = vld [vmem:[%s441_s13 + $0x20] sm:$0xff]  ;;  %484 = vst [vmem:[%s439_s24] sm:$0xff] %v483_v0  ;;  %486 = vst [vmem:[%s439_s24 + $0x8] sm:$0xff] %v485_v1  ;;  %v489_v3 = vld [vmem:[%s441_s13 + $0x30] sm:$0xff] }
  0x34   : > { %488 = vst [vmem:[%s439_s24 + $0x10] sm:$0xff] %v487_v2  ;;  %v491_v4 = vld [vmem:[%s441_s13 + $0x40] sm:$0xff]  ;;  %v493_v5 = vld [vmem:[%s441_s13 + $0x50] sm:$0xff]  ;;  %490 = vst [vmem:[%s439_s24 + $0x18] sm:$0xff] %v489_v3 }
  0x35   : > { %492 = vst [vmem:[%s439_s24 + $0x20] sm:$0xff] %v491_v4  ;;  %494 = vst [vmem:[%s439_s24 + $0x28] sm:$0xff] %v493_v5  ;;  %v495_v6 = vld [vmem:[%s441_s13 + $0x60] sm:$0xff]  ;;  %v497_v7 = vld [vmem:[%s441_s13 + $0x70] sm:$0xff] }
  0x36   : > { %496 = vst [vmem:[%s439_s24 + $0x30] sm:$0xff] %v495_v6  ;;  %498 = vst [vmem:[%s439_s24 + $0x38] sm:$0xff] %v497_v7 }
  0x37 PF: > { %p1951_p0 = scmp.ge.s32.totalorder %s2503_s22, 1  ;;  %p518_p1 = scmp.lt.s32.totalorder %s2503_s22, 5 }
  0x39   : > { %p519_p2 = pnand %p1951_p0, %p518_p1 }
  0x3a   : > { %s525_s14 = sand.u32 (!%p519_p2), 1, %s2479_s16   ;;  %s2989_s21 = sand.u32 (!%p519_p2), 1, %s2471_s30  }
  0x3b   : > { %522 = sbr.rel (%p519_p2) target bundleno = 2890 (0xb4a), region = 110  ;;  %s1952_s26 = sshll.u32 (!%p519_p2), %s525_s14, 6 }
  0x3c   : > { %s1953_s4 = sshll.u32 (!%p519_p2), %s2989_s21, 4  ;;  %s1954_s23 = sshll.u32 (!%p519_p2), %s2491_s19, 1 }
  0x3d   : > { %p589_p3 = scmp.lt.s32.totalorder (!%p519_p2), %s2487_s18, 1  ;;  %p584_p4 = scmp.lt.s32.totalorder (!%p519_p2), %s1954_s23, 3 }
  0x3e   : > { %s1956_s27 = sshll.u32 (!%p519_p2), %s2487_s18, 4  ;;  %s2717_s29 = scalar_lea.vmem (!%p519_p2), [#allocation4], %s1952_s26 }
  0x3f   : > { %p593_p5 = scmp.lt.s32.totalorder (!%p519_p2), %s1956_s27, 31  ;;  %s2719_s22 = scalar_lea.vmem (!%p519_p2), [#allocation5], %s1953_s4 }
  0x40   : > { %p1958_p6 = scmp.ne.s32.totalorder (!%p519_p2), %s2487_s18, 0 }
  0x42   : > { %s2703_s13 = scalar_select %p589_p3, %s2487_s18, 1 }
  0x43   : > { %s3044_s23 = smov (!%p584_p4, %s1954_s23), 3  ;;  %s3046_s27 = smov (!%p593_p5, %s1956_s27), 31 }
  0x44   : > { %s591_s20 = scalar_lea.vmem %s2979_s11, %s2703_s13  ;;  %s1955_s5 = sshll.u32 %s3044_s23, 3  ;;  %vm607_vm0 = vcmask (!%p1958_p6), 523264   ;;  %v1961_v9 = vld [vmem:[%s2977_s9] ss:$0 sm:$0xff] (!%p1958_p6) }
  0x45   : > { %s587_s14 = scalar_lea.vmem %s2968_s0, %s1955_s5  ;;  %s1957_s21 = sshll.u32 %s3046_s27, 3  ;;  %v2734_v25 = vld [vmem:[%s2969_s1] sm:$0xff] (!%p1958_p6) }
  0x46   : > { %s2715_s28 = scalar_lea.vmem %s2980_s12, %s1957_s21  ;;  %602 = sbr.rel (%p1958_p6) target bundleno = 2371 (0x943), region = 118  ;;  %v603_v8 = vld [vmem:[%s587_s14] sm:$0xff] (!%p1958_p6)  ;;  %v604_v10 = vld [vmem:[%s587_s14 + $0x8] sm:$0xff] (!%p1958_p6) }
  0x47   : > { %v608_v11 = vsel (!%p1958_p6), %vm607_vm0, %v603_v8, 0.0  ;;  %v659_v12 = vadd.f32 (!%p1958_p6), %v1961_v9, %v603_v8  ;;  %v660_v13 = vadd.f32 (!%p1958_p6), %v1961_v9, %v604_v10  ;;  %v611_v14 = vsel (!%p1958_p6), %vm607_vm0, %v604_v10, 0.0  ;;  %v1959_v33 = vld [vmem:[%s2970_s2] ss:$0 sm:$0xff] (!%p1958_p6)  ;;  %s2746_s4 = smov (!%p1958_p6), 0  }
  0x48   : > { %609 = vadd.xlane.f32.xlu0 (!%p1958_p6), %v608_v11  ;;  %v1960_v35 = vld [vmem:[%s2971_s3] ss:$0 sm:$0xff] (!%p1958_p6) }
  0x49   : > { %661 = vst.msk [vmem:[#allocation3] sm:$0xff] (!%p1958_p6), %vm607_vm0, %v659_v12  ;;  %662 = vst.msk [vmem:[#allocation3 + $0x8] sm:$0xff] (!%p1958_p6), %vm607_vm0, %v660_v13 }
  0x4c   : > { %612 = vadd.xlane.f32.xlu0 (!%p1958_p6), %v611_v14 }
  0xd5   : > { %v610_v15 = vpop.xlane.xlu0 %609 }
  0xd6   : > { %v615_v16 = vmul.f32 0.015625, %v610_v15 }
  0xd8   : > { %v617_v17 = vsub.f32 %v603_v8, %v615_v16 }
  0xd9   : > { %v613_v18 = vpop.xlane.xlu0 %612 }
  0xda   : > { %v616_v19 = vmul.f32 0.015625, %v613_v18  ;;  %v619_v20 = vmul.f32 %v617_v17, %v617_v17 }
  0xdc   : > { %v618_v21 = vsub.f32 %v604_v10, %v616_v19  ;;  %v621_v22 = vsel %vm607_vm0, %v619_v20, 0.0 }
  0xdd   : > { %622 = vadd.xlane.f32.xlu1 %v621_v22 }
  0xde   : > { %v620_v23 = vmul.f32 %v618_v21, %v618_v21 }
  0xe0   : > { %v624_v24 = vsel %vm607_vm0, %v620_v23, 0.0 }
  0xe1   : > { %625 = vadd.xlane.f32.xlu1 %v624_v24 }
 0x16a   : > { %v623_v26 = vpop.xlane.xlu1 %622 }
 0x16b   : > { %v627_v27 = vmul.f32 0.015625, %v623_v26 }
 0x16d   : > { %v629_v28 = vadd.f32 1e-05, %v627_v27 }
 0x16e   : > { %v626_v29 = vpop.xlane.xlu1 %625 }
 0x16f   : > { %2357 = vrsqrt.f32 %v629_v28  ;;  %v628_v30 = vmul.f32 0.015625, %v626_v29 }
 0x171   : > { %v630_v31 = vadd.f32 1e-05, %v628_v30 }
 0x173   : > { %2359 = vrsqrt.f32 %v630_v31 }
 0x179   : > { %v2358_v32 = vpop.eup %2357 }
 0x17a   : > { %v633_v34 = vmul.f32 %v2358_v32, %v617_v17 }
 0x17c   : > { %v641_v36 = vmul.f32 %v1959_v33, %v633_v34 }
 0x17d   : > { %v2360_v37 = vpop.eup %2359 }
 0x17e   : > { %v2742_v38 = vadd.f32 %v1960_v35, %v641_v36  ;;  %v634_v39 = vmul.f32 %v2360_v37, %v618_v21 }
 0x180   : > { %v642_v40 = vmul.f32 %v1959_v33, %v634_v39 }
 0x182   : > { %v2744_v41 = vadd.f32 %v1960_v35, %v642_v40 }
 0x183 LB: >> { %2072 = vmatprep.mubr.msk.f32.mxu0 %vm607_vm0, %v2742_v38  ;;  %s1962_s27 = sshll.u32 %s2507_s4, 6  ;;  %v2509_v54 = vmov 0.0   ;;  %vm2510_vm1 = vmmov 0   ;;  %s679_s5 = scalar_lea.vmem %s2975_s7, %s2507_s4  ;;  %vm771_vm2 = vcmask 130048   ;;  %vm923_vm3 = vcmask 64512   ;;  %s2507_s4 = sphi %s2746_s4, %s668_s4  }
 0x184   : >> { %s670_s14 = scalar_lea.vmem %s2974_s6, %s1962_s27  ;;  %2075 = vmatprep.subr.mxu1 %v2509_v54  ;;  %2077 = vmatprep.mubr.msk.f32.mxu1 %vm2510_vm1, %v2509_v54  ;;  %v1963_v55 = vld [vmem:[%s679_s5] ss:$0 sm:$0xff]  ;;  %s2511_s15 = smov 96   ;;  %vm1446_vm4 = vcmask 261120  }
 0x185   : >> { %v671_v42 = vld [vmem:[%s670_s14] sm:$0xff]  ;;  %v672_v43 = vld [vmem:[%s670_s14 + $0x8] sm:$0xff]  ;;  %v673_v44 = vld [vmem:[%s670_s14 + $0x10] sm:$0xff]  ;;  %s2512_s17 = smov 64   ;;  %s2513_s25 = smov 80  }
 0x186   : >> { %v2180_v45 = vpack.c.bf16 %v672_v43, %v671_v42  ;;  %v674_v46 = vld [vmem:[%s670_s14 + $0x18] sm:$0xff]  ;;  %v675_v48 = vld [vmem:[%s670_s14 + $0x20] sm:$0xff]  ;;  %v676_v49 = vld [vmem:[%s670_s14 + $0x28] sm:$0xff]  ;;  %s2514_s21 = smov 112   ;;  %s2515_s26 = smov 48  }
 0x187   : >> { %v2184_v47 = vpack.c.bf16 %v674_v46, %v673_v44  ;;  %v2188_v50 = vpack.c.bf16 %v676_v49, %v675_v48  ;;  %v677_v51 = vld [vmem:[%s670_s14 + $0x30] sm:$0xff]  ;;  %v678_v52 = vld [vmem:[%s670_s14 + $0x38] sm:$0xff]  ;;  %s1978_s27 = sshll.u32 %s2507_s4, 5  ;;  %s3016_s14 = sld [smem:[#allocation21_spill]] }
 0x188   : >> { %2181 = vmatprep.subr.bf16.mxu0 %v2180_v45  ;;  %v2192_v53 = vpack.c.bf16 %v678_v52, %v677_v51  ;;  %s2516_s23 = smov 16   ;;  %s668_s4 = sadd.s32 1, %s2507_s4  }
 0x189   : >> { %2183 = vmatpush3.bf16.msra.mxu0 %v2180_v45  ;;  %p665_p7 = scmp.ge.s32.totalorder %s668_s4, 2  }
 0x18a   : >> { %2185 = vmatprep.subr.bf16.mxu0 %v2184_v47 }
 0x18d   : >> { %2187 = vmatpush3.bf16.msra.mxu0 %v2184_v47  ;;  %s1441_s10 = scalar_lea.vmem %s3016_s14, %s1978_s27 }
 0x18e   : >> { %2189 = vmatprep.subr.bf16.mxu0 %v2188_v50  ;;  %v1442_v49 = vld [vmem:[%s1441_s10] sm:$0xff] }
 0x191   : >> { %2191 = vmatpush3.bf16.msra.mxu0 %v2188_v50  ;;  %v1443_v50 = vld [vmem:[%s1441_s10 + $0x8] sm:$0xff] }
 0x192   : >> { %2193 = vmatprep.subr.bf16.mxu0 %v2192_v53  ;;  %v2196_v51 = vpack.c.bf16 %v1443_v50, %v1442_v49 }
 0x195   : >> { %2195 = vmatpush3.bf16.msra.mxu0 %v2192_v53  ;;  %v1444_v53 = vld [vmem:[%s1441_s10 + $0x10] sm:$0xff] }
 0x196   : >> { %2105 = vmatprep.subr.mxu0 %v2509_v54 }
 0x198   : >> { %2073 = vmatmul.mubr.msk.f32.vlgmr.msra.gmra.mrb[0].mxu0 %vm607_vm0, %v2744_v41 }
 0x199   : >> { %2107 = vmatprep.mubr.msk.f32.mxu0 %vm2510_vm1, %v2509_v54 }
 0x26b   : >> { %v2074_v56 = vpop.f32.mrb[0].mxu0 }
 0x26c   : >> { %v759_v57 = vpop.f32.mrb[1].mxu0  ;;  %v2772_v59 = vadd.f32 %v2074_v56, %v1963_v55 }
 0x26d   : >> { %v2769_v58 = vadd.f32 %v1963_v55, %v759_v57 }
 0x26f   : >> { %769 = vrot.lane.b32.xlu0 %v2769_v58, %s2511_s15 }
 0x273   : >> { %847 = vrot.lane.b32.xlu0 %v2772_v59, %s2511_s15  ;;  %s3017_s15 = sld [smem:[#allocation19_spill]] (%p665_p7) }
 0x277   : >> { %942 = vrot.lane.b32.xlu0 %v2769_v58, %s2512_s17 }
 0x27b   : >> { %1100 = vrot.lane.b32.xlu0 %v2769_v58, %s2513_s25 }
 0x27f   : >> { %1098 = vrot.lane.b32.xlu0 %v2769_v58, %s2514_s21 }
 0x283   : >> { %1178 = vrot.lane.b32.xlu0 %v2772_v59, %s2513_s25 }
 0x287   : >> { %1176 = vrot.lane.b32.xlu0 %v2772_v59, %s2514_s21  ;;  %s3018_s21 = sld [smem:[#allocation20_spill]] (%p665_p7) }
 0x2e1   : >> { %v770_v60 = vpop.permute.xlu0 %769 }
 0x2e2   : >> { %2076 = vmatpush3.xpose.msk.msra.mxu1 %vm771_vm2, %v770_v60 }
 0x2e3   : >> { %2080 = vmatprep.subr.mxu1 %v2509_v54 }
 0x2e5   : >> { %2078 = vmatmul.mubr.msk.f32.vlgmr.msra.gmra.mrb[0].mxu1 %vm771_vm2, %v2769_v58  ;;  %v848_v61 = vpop.permute.xlu0 %847 }
 0x2e6   : >> { %2081 = vmatpush3.xpose.msk.msra.mxu1 %vm771_vm2, %v848_v61  ;;  %2082 = vmatprep.mubr.msk.f32.mxu1 %vm2510_vm1, %v2509_v54 }
 0x2e7   : >> { %2085 = vmatprep.subr.mxu1 %v2509_v54 }
 0x2e9   : >> { %2083 = vmatmul.mubr.msk.f32.vlgmr.msra.gmra.mrb[2].mxu1 %vm771_vm2, %v2772_v59  ;;  %v943_v62 = vpop.permute.xlu0 %942 }
 0x2ea   : >> { %2086 = vmatpush3.msra.mxu1 %v943_v62  ;;  %2087 = vmatprep.mubr.msk.f32.mxu1 %vm2510_vm1, %v2509_v54 }
 0x2eb   : >> { %2090 = vmatprep.subr.mxu1 %v2509_v54 }
 0x2ed   : >> { %v1101_v13 = vpop.permute.xlu0 %1100 }
 0x2f1   : >> { %v1099_v16 = vpop.permute.xlu0 %1098 }
 0x2f5   : >> { %v1179_v18 = vpop.permute.xlu0 %1178 }
 0x2f9   : >> { %v1177_v19 = vpop.permute.xlu0 %1176 }
 0x3b8   : >> { %v842_v63 = vpop.f32.mrb[0].mxu1 }
 0x3b9   : >> { %v843_v0 = vadd.f32 %v842_v63, %v2734_v25  ;;  %v2079_v1 = vpop.f32.mrb[1].mxu1 }
 0x3bb   : >> { %v924_v2 = vsel %vm923_vm3, %v843_v0, -inf }
 0x3bc   : >> { %925 = vmax.xlane.f32.xlu1 %v924_v2  ;;  %v919_v3 = vpop.f32.mrb[2].mxu1 }
 0x3bd   : >> { %v920_v4 = vadd.f32 %v919_v3, %v2734_v25  ;;  %v2084_v5 = vpop.f32.mrb[3].mxu1 }
 0x3bf   : >> { %v927_v6 = vsel %vm923_vm3, %v920_v4, -inf }
 0x3c0   : >> { %928 = vmax.xlane.f32.xlu1 %v927_v6 }
 0x3d1   : >> { %1018 = vrot.lane.b32.xlu1 %v2772_v59, %s2512_s17 }
 0x449   : >> { %v926_v7 = vpop.xlane.xlu1 %925 }
 0x44a   : >> { %v930_v8 = vsub.f32 %v843_v0, %v926_v7 }
 0x44c   : >> { %v932_v9 = vmul.f32 1.442695, %v930_v8 }
 0x44d   : >> { %v929_v10 = vpop.xlane.xlu1 %928 }
 0x44e   : >> { %2361 = vpow2.f32 %v932_v9  ;;  %v931_v11 = vsub.f32 %v920_v4, %v929_v10 }
 0x450   : >> { %v934_v12 = vmul.f32 1.442695, %v931_v11  ;;  %v1439_v11 = vld [vmem:[#allocation3 + $0x8] sm:$0xff] }
 0x451   : >> { %v1019_v15 = vpop.permute.xlu1 %1018 }
 0x452   : >> { %2363 = vpow2.f32 %v934_v12  ;;  %v1438_v12 = vld [vmem:[#allocation3] sm:$0xff] }
 0x458   : >> { %v2362_v14 = vpop.eup %2361 }
 0x459   : >> { %2088 = vmatmul.mubr.msk.f32.vlgmr.msra.gmra.mrb[4].mxu1 %vm923_vm3, %v2362_v14  ;;  %v936_v48 = vsel %vm923_vm3, %v2362_v14, 0.0 }
 0x45a   : >> { %2091 = vmatpush3.msra.mxu1 %v1019_v15  ;;  %2092 = vmatprep.mubr.msk.f32.mxu1 %vm2510_vm1, %v2509_v54 }
 0x45b   : >> { %2095 = vmatprep.subr.mxu1 %v2509_v54 }
 0x45c   : >> { %v2364_v17 = vpop.eup %2363 }
 0x45d   : >> { %2093 = vmatmul.mubr.msk.f32.vlgmr.msra.gmra.mrb[6].mxu1 %vm923_vm3, %v2364_v17  ;;  %v939_v46 = vsel %vm923_vm3, %v2364_v17, 0.0 }
 0x45e   : >> { %2097 = vmatprep.mubr.msk.f32.mxu1 %vm2510_vm1, %v2509_v54 }
 0x461   : >> { %2096 = vmatpush3.xpose.msk.msra.mxu1 %vm771_vm2, %v1101_v13 }
 0x462   : >> { %2100 = vmatprep.subr.mxu1 %v2509_v54 }
 0x464   : >> { %2098 = vmatmul.mubr.msk.f32.vlgmr.msra.gmra.mrb[8].mxu1 %vm771_vm2, %v1099_v16 }
 0x465   : >> { %2101 = vmatpush3.xpose.msk.msra.mxu1 %vm771_vm2, %v1179_v18  ;;  %2102 = vmatprep.mubr.msk.f32.mxu1 %vm2510_vm1, %v2509_v54 }
 0x466   : >> { %2110 = vmatprep.subr.mxu1 %v2509_v54 }
 0x468   : >> { %2103 = vmatmul.mubr.msk.f32.vlgmr.msra.gmra.mrb[10].mxu1 %vm771_vm2, %v1177_v19 }
 0x469   : >> { %2112 = vmatprep.mubr.msk.f32.mxu1 %vm2510_vm1, %v2509_v54  ;;  %v1445_v54 = vld [vmem:[%s1441_s10 + $0x18] sm:$0xff] }
 0x46a   : >> { %v2200_v55 = vpack.c.bf16 %v1445_v54, %v1444_v53 }
 0x52c   : >> { %v2817_v20 = vpop.f32.mrb[4].mxu1 }
 0x52d   : >> { %v2089_v21 = vpop.f32.mrb[5].mxu1 }
 0x530   : >> { %v2819_v22 = vpop.f32.mrb[6].mxu1 }
 0x531   : >> { %v2094_v23 = vpop.f32.mrb[7].mxu1 }
 0x537   : >> { %v1172_v24 = vpop.f32.mrb[8].mxu1 }
 0x538   : >> { %v1173_v26 = vadd.f32 %v1172_v24, %v2734_v25  ;;  %v2099_v27 = vpop.f32.mrb[9].mxu1 }
 0x53a   : >> { %v1254_v28 = vsel %vm923_vm3, %v1173_v26, -inf }
 0x53b   : >> { %1255 = vmax.xlane.f32.xlu1 %v1254_v28  ;;  %v1250_v29 = vpop.f32.mrb[10].mxu1 }
 0x53c   : >> { %v1251_v30 = vadd.f32 %v1250_v29, %v2734_v25  ;;  %v2104_v31 = vpop.f32.mrb[11].mxu1 }
 0x53e   : >> { %v1257_v32 = vsel %vm923_vm3, %v1251_v30, -inf }
 0x53f   : >> { %1258 = vmax.xlane.f32.xlu0 %v1257_v32 }
 0x54c   : >> { %1348 = vrot.lane.b32.xlu1 %v2772_v59, %s2515_s26 }
 0x555   : >> { %1272 = vrot.lane.b32.xlu0 %v2769_v58, %s2515_s26 }
 0x5c8   : >> { %v1256_v33 = vpop.xlane.xlu1 %1255 }
 0x5c9   : >> { %v1260_v34 = vsub.f32 %v1173_v26, %v1256_v33 }
 0x5cb   : >> { %v1262_v35 = vmul.f32 1.442695, %v1260_v34 }
 0x5cc   : >> { %v1349_v36 = vpop.permute.xlu1 %1348  ;;  %v1259_v37 = vpop.xlane.xlu0 %1258 }
 0x5cd   : >> { %2365 = vpow2.f32 %v1262_v35  ;;  %v1261_v39 = vsub.f32 %v1251_v30, %v1259_v37  ;;  %2111 = vmatpush3.msra.mxu1 %v1349_v36  ;;  %v1981_v36 = vld [vmem:[%s3017_s15] ss:$0 sm:$0xff] (%p665_p7) }
 0x5cf   : >> { %v1264_v40 = vmul.f32 1.442695, %v1261_v39  ;;  %v1982_v39 = vld [vmem:[%s3018_s21] ss:$0 sm:$0xff] (%p665_p7) }
 0x5d0   : >> { %v1273_v42 = vpop.permute.xlu0 %1272 }
 0x5d1   : >> { %2367 = vpow2.f32 %v1264_v40  ;;  %2106 = vmatpush3.msra.mxu0 %v1273_v42 }
 0x5d2   : >> { %2197 = vmatprep.subr.bf16.mxu0 %v2196_v51 }
 0x5d7   : >> { %v2366_v43 = vpop.eup %2365 }
 0x5d8   : >> { %2108 = vmatmul.mubr.msk.f32.vlgmr.msra.gmra.mrb[2].mxu0 %vm923_vm3, %v2366_v43  ;;  %v1266_v44 = vsel %vm923_vm3, %v2366_v43, 0.0 }
 0x5d9   : >> { %1267 = vadd.xlane.f32.xlu1 %v1266_v44  ;;  %2199 = vmatpush3.bf16.msra.mxu0 %v2196_v51 }
 0x5da   : >> { %2201 = vmatprep.subr.bf16.mxu0 %v2200_v55 }
 0x5db   : >> { %v2368_v45 = vpop.eup %2367 }
 0x5dc   : >> { %2113 = vmatmul.mubr.msk.f32.vlgmr.msra.gmra.mrb[12].mxu1 %vm923_vm3, %v2368_v45  ;;  %v1269_v47 = vsel %vm923_vm3, %v2368_v45, 0.0 }
 0x5dd   : >> { %940 = vadd.xlane.f32.xlu1 %v939_v46  ;;  %1270 = vadd.xlane.f32.xlu0 %v1269_v47 }
 0x5de   : >> { %2203 = vmatpush3.bf16.msra.mxu0 %v2200_v55 }
 0x5e1   : >> { %937 = vadd.xlane.f32.xlu0 %v936_v48 }
 0x666   : >> { %v1268_v52 = vpop.xlane.xlu1 %1267 }
 0x667   : >> { %2369 = vrcp.f32 %v1268_v52 }
 0x66a   : >> { %v1271_v56 = vpop.xlane.xlu0 %1270  ;;  %v941_v2 = vpop.xlane.xlu1 %940 }
 0x66b   : >> { %2371 = vrcp.f32 %v1271_v56 }
 0x66e   : >> { %v938_v1 = vpop.xlane.xlu0 %937 }
 0x66f   : >> { %2373 = vrcp.f32 %v938_v1 }
 0x670   : >> { %2375 = vrcp.f32 %v941_v2 }
 0x671   : >> { %v2370_v57 = vpop.eup %2369 }
 0x675   : >> { %v2372_v61 = vpop.eup %2371 }
 0x679   : >> { %v2374_v3 = vpop.eup %2373 }
 0x67a   : >> { %v1096_v4 = vmul.f32 %v2374_v3, %v2817_v20  ;;  %v2376_v5 = vpop.eup %2375 }
 0x67b   : >> { %v1097_v8 = vmul.f32 %v2376_v5, %v2819_v22 }
 0x6ab   : >> { %v1344_v58 = vpop.f32.mrb[2].mxu0 }
 0x6ac   : >> { %v1426_v59 = vmul.f32 %v2370_v57, %v1344_v58  ;;  %v2109_v60 = vpop.f32.mrb[3].mxu0 }
 0x6ae   : >> { %1430 = vrot.lane.b32.xlu0 %v1426_v59, %s2516_s23 }
 0x6af   : >> { %v1420_v62 = vpop.f32.mrb[12].mxu1 }
 0x6b0   : >> { %v1427_v63 = vmul.f32 %v2372_v61, %v1420_v62  ;;  %v2114_v0 = vpop.f32.mrb[13].mxu1 }
 0x6b2   : >> { %1432 = vrot.lane.b32.xlu1 %v1427_v63, %s2516_s23 }
 0x720   : >> { %v1431_v6 = vpop.permute.xlu0 %1430 }
 0x721   : >> { %v1436_v7 = vsel %vm771_vm2, %v1096_v4, %v1431_v6 }
 0x722   : >> { %2123 = vmatprep.mubr.msk.f32.mxu0 %vm1446_vm4, %v1436_v7 }
 0x724   : >> { %v1433_v9 = vpop.permute.xlu1 %1432 }
 0x725   : >> { %v1437_v10 = vsel %vm771_vm2, %v1097_v8, %v1433_v9 }
 0x726   : >> { %2124 = vmatmul.mubr.msk.f32.vlgmr.msra.gmra.mrb[4].mxu0 %vm1446_vm4, %v1437_v10 }
 0x7f7   : > { %667 = sbr.rel (!%p665_p7) target bundleno = 387 (0x183), region = 181 }
 0x7f9   : >> { %v2125_v13 = vpop.f32.mrb[4].mxu0 }
 0x7fa   : >> { %v1529_v14 = vadd.f32 %v2125_v13, %v1439_v11  ;;  %v1519_v15 = vpop.f32.mrb[5].mxu0 }
 0x7fb   : >> { %v1528_v16 = vadd.f32 %v1519_v15, %v1438_v12 }
 0x7fc   : >> { %1531 = vst.msk [vmem:[#allocation3 + $0x8] sm:$0xff] %vm607_vm0, %v1529_v14 }
 0x7fd   : >> { %1530 = vst.msk [vmem:[#allocation3] sm:$0xff] %vm607_vm0, %v1528_v16 }
 0x803   : > { %v1533_v18 = vld [vmem:[#allocation3 + $0x8] sm:$0xff] }
 0x804   : > { %v1532_v17 = vld [vmem:[#allocation3] sm:$0xff]  ;;  %v1539_v20 = vsel %vm607_vm0, %v1533_v18, 0.0 }
 0x805   : > { %v1536_v19 = vsel %vm607_vm0, %v1532_v17, 0.0 }
 0x806   : > { %1537 = vadd.xlane.f32.xlu0 %v1536_v19 }
 0x80a   : > { %1540 = vadd.xlane.f32.xlu0 %v1539_v20 }
 0x893   : > { %v1538_v21 = vpop.xlane.xlu0 %1537 }
 0x894   : > { %v1542_v22 = vmul.f32 0.015625, %v1538_v21 }
 0x896   : > { %v1544_v23 = vsub.f32 %v1532_v17, %v1542_v22 }
 0x897   : > { %v1541_v24 = vpop.xlane.xlu0 %1540 }
 0x898   : > { %v1543_v26 = vmul.f32 0.015625, %v1541_v24  ;;  %v1546_v27 = vmul.f32 %v1544_v23, %v1544_v23 }
 0x89a   : > { %v1545_v28 = vsub.f32 %v1533_v18, %v1543_v26  ;;  %v1548_v29 = vsel %vm607_vm0, %v1546_v27, 0.0 }
 0x89b   : > { %1549 = vadd.xlane.f32.xlu1 %v1548_v29 }
 0x89c   : > { %v1547_v30 = vmul.f32 %v1545_v28, %v1545_v28 }
 0x89e   : > { %v1551_v25 = vsel %vm607_vm0, %v1547_v30, 0.0 }
 0x89f   : > { %1552 = vadd.xlane.f32.xlu1 %v1551_v25 }
 0x928   : > { %v1550_v38 = vpop.xlane.xlu1 %1549 }
 0x929   : > { %v1554_v41 = vmul.f32 0.015625, %v1550_v38 }
 0x92b   : > { %v1556_v31 = vadd.f32 1e-05, %v1554_v41 }
 0x92c   : > { %v1553_v32 = vpop.xlane.xlu1 %1552 }
 0x92d   : > { %2377 = vrsqrt.f32 %v1556_v31  ;;  %v1555_v33 = vmul.f32 0.015625, %v1553_v32 }
 0x92f   : > { %v1557_v34 = vadd.f32 1e-05, %v1555_v33 }
 0x931   : > { %2379 = vrsqrt.f32 %v1557_v34 }
 0x937   : > { %v2378_v35 = vpop.eup %2377 }
 0x938   : > { %v1560_v37 = vmul.f32 %v2378_v35, %v1544_v23 }
 0x93a   : > { %v1568_v40 = vmul.f32 %v1981_v36, %v1560_v37 }
 0x93b   : > { %v2380_v42 = vpop.eup %2379 }
 0x93c   : > { %v1576_v43 = vadd.f32 %v1982_v39, %v1568_v40  ;;  %v1561_v44 = vmul.f32 %v2380_v42, %v1545_v28 }
 0x93e   : > { %1578 = vst.msk [vmem:[#allocation2] sm:$0xff] %vm607_vm0, %v1576_v43  ;;  %v1569_v45 = vmul.f32 %v1981_v36, %v1561_v44 }
 0x940   : > { %v1577_v46 = vadd.f32 %v1982_v39, %v1569_v45 }
 0x942   : > { %1579 = vst.msk [vmem:[#allocation2 + $0x8] sm:$0xff] %vm607_vm0, %v1577_v46 }
 0x943 PF: > { %v1582_v47 = vld [vmem:[%s2717_s29] sm:$0xff]  ;;  %v1583_v48 = vld [vmem:[%s2717_s29 + $0x8] sm:$0xff]  ;;  %v1584_v49 = vld [vmem:[%s2717_s29 + $0x10] sm:$0xff]  ;;  %vm1597_vm5 = vcmask 523264   ;;  %p1988_p8 = scmp.ne.s32.totalorder %s2487_s18, 1 }
 0x944   : > { %v2204_v50 = vpack.c.bf16 %v1583_v48, %v1582_v47  ;;  %v1585_v51 = vld [vmem:[%s2717_s29 + $0x18] sm:$0xff]  ;;  %v1586_v53 = vld [vmem:[%s2717_s29 + $0x20] sm:$0xff]  ;;  %v1587_v54 = vld [vmem:[%s2717_s29 + $0x28] sm:$0xff]  ;;  %s3019_s13 = sld [smem:[#allocation23_spill]] (!%p1988_p8) }
 0x945   : > { %v2208_v52 = vpack.c.bf16 %v1585_v51, %v1584_v49  ;;  %v1580_v55 = vld [vmem:[#allocation2] sm:$0xff]  ;;  %v2212_v56 = vpack.c.bf16 %v1587_v54, %v1586_v53  ;;  %v1588_v57 = vld [vmem:[%s2717_s29 + $0x30] sm:$0xff]  ;;  %v1589_v58 = vld [vmem:[%s2717_s29 + $0x38] sm:$0xff] }
 0x946   : > { %2205 = vmatprep.subr.bf16.mxu0 %v2204_v50  ;;  %2142 = vmatprep.mubr.msk.f32.mxu0 %vm1597_vm5, %v1580_v55  ;;  %v2216_v59 = vpack.c.bf16 %v1589_v58, %v1588_v57  ;;  %v1697_v61 = vld [vmem:[%s2715_s28] sm:$0xff]  ;;  %v1698_v62 = vld [vmem:[%s2715_s28 + $0x8] sm:$0xff]  ;;  %v1699_v0 = vld [vmem:[%s2715_s28 + $0x10] sm:$0xff] }
 0x947   : > { %2207 = vmatpush3.bf16.msra.mxu0 %v2204_v50  ;;  %v2220_v63 = vpack.c.bf16 %v1698_v62, %v1697_v61  ;;  %v1700_v1 = vld [vmem:[%s2715_s28 + $0x18] sm:$0xff]  ;;  %v1701_v3 = vld [vmem:[%s2715_s28 + $0x20] sm:$0xff]  ;;  %v1702_v4 = vld [vmem:[%s2715_s28 + $0x28] sm:$0xff] }
 0x948   : > { %2209 = vmatprep.subr.bf16.mxu0 %v2208_v52  ;;  %v2224_v2 = vpack.c.bf16 %v1700_v1, %v1699_v0  ;;  %v2228_v5 = vpack.c.bf16 %v1702_v4, %v1701_v3  ;;  %v1703_v6 = vld [vmem:[%s2715_s28 + $0x30] sm:$0xff]  ;;  %v1704_v7 = vld [vmem:[%s2715_s28 + $0x38] sm:$0xff]  ;;  %v1705_v9 = vld [vmem:[%s2715_s28 + $0x40] sm:$0xff] }
 0x949   : > { %v1581_v60 = vld [vmem:[#allocation2 + $0x8] sm:$0xff]  ;;  %2221 = vmatprep.subr.bf16.mxu1 %v2220_v63  ;;  %v2232_v8 = vpack.c.bf16 %v1704_v7, %v1703_v6  ;;  %v1707_v12 = vld [vmem:[%s2715_s28 + $0x50] sm:$0xff]  ;;  %v1708_v13 = vld [vmem:[%s2715_s28 + $0x58] sm:$0xff] }
 0x94a   : > { %2223 = vmatpush3.bf16.msra.mxu1 %v2220_v63  ;;  %v1706_v10 = vld [vmem:[%s2715_s28 + $0x48] sm:$0xff]  ;;  %v2240_v14 = vpack.c.bf16 %v1708_v13, %v1707_v12  ;;  %v1709_v15 = vld [vmem:[%s2715_s28 + $0x60] sm:$0xff]  ;;  %v1711_v18 = vld [vmem:[%s2715_s28 + $0x70] sm:$0xff] }
 0x94b   : > { %2211 = vmatpush3.bf16.msra.mxu0 %v2208_v52  ;;  %2225 = vmatprep.subr.bf16.mxu1 %v2224_v2  ;;  %v2236_v11 = vpack.c.bf16 %v1706_v10, %v1705_v9  ;;  %v1710_v16 = vld [vmem:[%s2715_s28 + $0x68] sm:$0xff]  ;;  %v1712_v19 = vld [vmem:[%s2715_s28 + $0x78] sm:$0xff]  ;;  %v1983_v21 = vld [vmem:[%s591_s20] ss:$0 sm:$0xff] }
 0x94c   : > { %2213 = vmatprep.subr.bf16.mxu0 %v2212_v56  ;;  %v2244_v17 = vpack.c.bf16 %v1710_v16, %v1709_v15  ;;  %v2248_v20 = vpack.c.bf16 %v1712_v19, %v1711_v18  ;;  %v1696_v36 = vld [vmem:[#allocation3 + $0x8] sm:$0xff]  ;;  %v1695_v37 = vld [vmem:[#allocation3] sm:$0xff]  ;;  %v1989_v45 = vld [vmem:[%s3019_s13] ss:$0 sm:$0xff] (!%p1988_p8) }
 0x94e   : > { %2227 = vmatpush3.bf16.msra.mxu1 %v2224_v2 }
 0x94f   : > { %2215 = vmatpush3.bf16.msra.mxu0 %v2212_v56  ;;  %2229 = vmatprep.subr.bf16.mxu1 %v2228_v5 }
 0x950   : > { %2217 = vmatprep.subr.bf16.mxu0 %v2216_v59 }
 0x952   : > { %2231 = vmatpush3.bf16.msra.mxu1 %v2228_v5 }
 0x953   : > { %2219 = vmatpush3.bf16.msra.mxu0 %v2216_v59  ;;  %2233 = vmatprep.subr.bf16.mxu1 %v2232_v8 }
 0x956   : > { %2143 = vmatmul.mubr.msk.f32.vlgmr.msra.gmra.mrb[0].mxu0 %vm1597_vm5, %v1581_v60  ;;  %2235 = vmatpush3.bf16.msra.mxu1 %v2232_v8 }
 0x957   : > { %2237 = vmatprep.subr.bf16.mxu1 %v2236_v11 }
 0x95a   : > { %2239 = vmatpush3.bf16.msra.mxu1 %v2236_v11 }
 0x95b   : > { %2241 = vmatprep.subr.bf16.mxu1 %v2240_v14 }
 0x95e   : > { %2243 = vmatpush3.bf16.msra.mxu1 %v2240_v14 }
 0x95f   : > { %2245 = vmatprep.subr.bf16.mxu1 %v2244_v17 }
 0x962   : > { %2247 = vmatpush3.bf16.msra.mxu1 %v2244_v17 }
 0x963   : > { %2249 = vmatprep.subr.bf16.mxu1 %v2248_v20 }
 0x966   : > { %2251 = vmatpush3.bf16.msra.mxu1 %v2248_v20 }
 0xa29   : > { %v2144_v22 = vpop.f32.mrb[0].mxu0 }
 0xa2a   : > { %v1676_v23 = vadd.f32 %v2144_v22, %v1983_v21  ;;  %v1670_v24 = vpop.f32.mrb[1].mxu0 }
 0xa2b   : > { %v1671_v26 = vadd.f32 %v1983_v21, %v1670_v24 }
 0xa2c   : > { %v1987_v27 = vmul.f32 -1.702, %v1676_v23 }
 0xa2d   : > { %v1986_v28 = vmul.f32 -1.702, %v1671_v26 }
 0xa2e   : > { %v1685_v29 = vmul.f32 1.442695, %v1987_v27 }
 0xa2f   : > { %v1683_v30 = vmul.f32 1.442695, %v1986_v28 }
 0xa30   : > { %2381 = vpow2.f32 %v1685_v29 }
 0xa31   : > { %2383 = vpow2.f32 %v1683_v30 }
 0xa3a   : > { %v2382_v25 = vpop.eup %2381 }
 0xa3b   : > { %v2384_v38 = vpop.eup %2383  ;;  %v1688_v41 = vadd.f32 1.0, %v2382_v25 }
 0xa3c   : > { %v1687_v31 = vadd.f32 1.0, %v2384_v38 }
 0xa3d   : > { %2385 = vrcp.f32 %v1688_v41 }
 0xa3e   : > { %2387 = vrcp.f32 %v1687_v31 }
 0xa47   : > { %v2386_v32 = vpop.eup %2385 }
 0xa48   : > { %v2388_v33 = vpop.eup %2387  ;;  %v1694_v35 = vmul.f32 %v2386_v32, %v1676_v23 }
 0xa49   : > { %v1693_v34 = vmul.f32 %v2388_v33, %v1671_v26 }
 0xa4b   : > { %2177 = vmatprep.mubr.f32.mxu1 %v1693_v34 }
 0xa4c   : > { %2178 = vmatmul.mubr.f32.vlgmr.msra.gmra.mrb[0].mxu1 %v1694_v35 }
 0xb1d   : > { %1795 = sbr.rel (%p1988_p8) target bundleno = 2862 (0xb2e), region = 129 }
 0xb1f   : > { %v2179_v39 = vpop.f32.mrb[0].mxu1 }
 0xb20   : > { %v1789_v40 = vadd.f32 %v2179_v39, %v1696_v36  ;;  %v1779_v42 = vpop.f32.mrb[1].mxu1 }
 0xb21   : > { %v1788_v43 = vadd.f32 %v1779_v42, %v1695_v37 }
 0xb22   : > { %1791 = vst.msk [vmem:[#allocation3 + $0x8] sm:$0xff] %vm1597_vm5, %v1789_v40 }
 0xb23   : > { %1790 = vst.msk [vmem:[#allocation3] sm:$0xff] %vm1597_vm5, %v1788_v43 }
 0xb29   : > { %v1797_v46 = vld [vmem:[#allocation3 + $0x8] sm:$0xff] }
 0xb2a   : > { %v1796_v44 = vld [vmem:[#allocation3] sm:$0xff]  ;;  %v1806_v48 = vadd.f32 %v1989_v45, %v1797_v46 }
 0xb2b   : > { %v1805_v47 = vadd.f32 %v1989_v45, %v1796_v44 }
 0xb2c   : > { %1808 = vst.msk [vmem:[%s2719_s22 + $0x8] sm:$0xff] %vm1597_vm5, %v1806_v48 }
 0xb2d   : > { %1807 = vst.msk [vmem:[%s2719_s22] sm:$0xff] %vm1597_vm5, %v1805_v47 }
 0xb2e PF: > { %s1995_s18 = sshll.u32 %s2491_s19, 8  ;;  %s3020_s16 = sld [smem:[#allocation24_spill]] }
 0xb2f   : > { %s1823_s23 = sshll.u32 %s2719_s22, 4  ;;  %s3022_s4 = sand.u32 1, %s2471_s30   ;;  %s2906_s23 = int_to_ptr.vmem [resolvable:$true] %s1823_s23 }
 0xb30   : > { %s2910_s5 = scalar_lea.sflag [#allocation6], %s3022_s4  ;;  %s2389_s15 = scalar_lea.vmem %s2906_s23, 256 }
 0xb31   : > { %p2390_p9 = scmp.ne.s32.totalorder %s2906_s23, %s2389_s15  ;;  %s2517_s19 = smov [#allocation5]  }
 0xb32   : > { %s2393_s17 = sshll.u32 %s2517_s19, 4  ;;  %s2394_s17 = int_to_ptr.vmem [resolvable:$false] %s2393_s17 }
 0xb33   : > { %p2391_p11 = pnand %p2390_p9, %p2674_p10  ;;  %s2395_s25 = scalar_lea.vmem %s2394_s17, 512 }
 0xb34   : > { %s3021_s14 = smov %s3020_s16  ;;  %s2903_s10 = scalar_lea.hbm %s3020_s16, %s1995_s18 }
 0xb35   : > { %p2392_p13 = pneg %p2391_p11  ;;  %p2396_p0 = scmp.lt.s32.totalorder %s2906_s23, %s2394_s17 }
 0xb36   : > { %p2397_p1 = scmp.lt.s32.totalorder %s2395_s25, %s2389_s15 }
 0xb38   : > { %p2398_p2 = por %p2397_p1, %p2396_p0 }
 0xb3a   : > { %p2399_p3 = pnand %p2398_p2, %p2392_p13 }
 0xb3c   : > { %2402 = shalt.err (!%p2399_p3)
}
 0xb3d   : > { %s2403_s22 = scalar_lea.hbm %s2903_s10, 256  ;;  %s2407_s26 = scalar_lea.hbm %s3021_s14, 512 }
 0xb3e   : > { %p2404_p4 = scmp.ne.s32.totalorder %s2903_s10, %s2403_s22  ;;  %p2408_p7 = scmp.lt.u32.totalorder %s2903_s10, %s3021_s14 }
 0xb3f   : > { %p2409_p8 = scmp.lt.u32.totalorder %s2407_s26, %s2403_s22  ;;  %p2411_p11 = scmp.lt.u32.totalorder %s2403_s22, %s2903_s10 }
 0xb40   : > { %p2405_p5 = pnand %p2404_p4, %p2674_p10 }
 0xb41   : > { %p2410_p9 = por %p2409_p8, %p2408_p7 }
 0xb42   : > { %p2406_p6 = pneg %p2405_p5 }
 0xb43   : > { %p2412_p13 = por %p2411_p11, %p2410_p9 }
 0xb45   : > { %p2413_p0 = pnand %p2412_p13, %p2406_p6 }
 0xb47   : > { %2416 = shalt.err (!%p2413_p0)
}
 0xb48   : > { %s2518_s13 = smov 128   ;;  %s2519_s18 = smov 8  }
 0xb49   : > { %2252 = dma.vmem_to_hbm [thread:$0]  (%p2674_p10), %s2906_s23, 256, %s2903_s10, %s2910_s5, %s2518_s13, %s2518_s13, %s2519_s18  }
 0xb4a PF: > { %s3023_s27 = sld [smem:[#allocation13_spill]]  ;;  %s3024_s24 = sld [smem:[#allocation8_spill]] }
 0xb50   : > { %p2258_p1 = scmp.ge.s32.totalorder %s3023_s27, 2  ;;  %s1838_s4 = sand.u32 1, %s3024_s24  }
 0xb51   : > { %s1839_s15 = scalar_lea.sflag [#allocation6], %s1838_s4 }
 0xb52   : > { %p2255_p2 = pnand %p2258_p1, %p2681_p12 }
 0xb54   : > { %2462 = dma.done.wait (!%p2255_p2), %s1839_s15, 256  }
 0xb55   : > { %2464 = vsyncadd (!%p2255_p2), %s1839_s15, 4294967040  ;;  %s27_s22 = sadd.s32 1, %s3023_s27   ;;  %s3026_s19 = sld [smem:[#allocation9_spill]] }
 0xb56   : > { %p24_p3 = scmp.ge.s32.totalorder %s27_s22, 6   ;;  %s3027_s15 = sld [smem:[#allocation17_spill]] }
 0xb57   : > { %s3028_s16 = sld [smem:[#allocation10_spill]]  ;;  %s3029_s17 = sld [smem:[#allocation16_spill]] }
 0xb58   : > { %s3030_s18 = sld [smem:[#allocation11_spill]]  ;;  %s3031_s8 = sld [smem:[#allocation12_spill]] }
 0xb59   : > { %s3032_s20 = sld [smem:[#allocation14_spill]]  ;;  %s3033_s21 = sld [smem:[#allocation15_spill]] }
 0xb5a   : > { %s3034_s29 = smov %s2471_s30  ;;  %26 = sbr.rel (!%p24_p3) target bundleno = 13 (0xd), region = 192 }
 0xb5b   : > { %s3035_s30 = smov %s3026_s19 }
 0xb5e   : > { %s3036_s19 = smov %s3031_s8 }
 0xb61   :  { %1844 = vsyncpa [#allocation6], 1 }
 0xb62   :  { %1846 = vsyncpa [#allocation6 + $0x1], 1 }

// kernel: tpu_custom_call.1
= control target key start
LH: loop header
LB: loop body
LE: loop exit
PB: predicated region body
PF: predicated region fallthrough
CT: control target
= control target key end

     0   :  { %s2968_s0 = inlined_call_operand.vmem [shape: f32[4,8,64], index: 0, kind: input, shape index: {}]   ;;  %s2969_s1 = inlined_call_operand.vmem [shape: f32[8,8], index: 1, kind: input, shape index: {}]   ;;  %s2970_s2 = inlined_call_operand.vmem [shape: f32[1,64], index: 2, kind: input, shape index: {}]   ;;  %s2971_s3 = inlined_call_operand.vmem [shape: f32[1,64], index: 3, kind: input, shape index: {}]   ;;  %s2972_s4 = inlined_call_operand.vmem [shape: f32[1,64], index: 4, kind: input, shape index: {}]   ;;  %s2973_s5 = inlined_call_operand.vmem [shape: f32[1,64], index: 5, kind: input, shape index: {}]   ;;  %s2974_s6 = inlined_call_operand.vmem [shape: f32[2,64,96], index: 6, kind: input, shape index: {}]   ;;  %s2975_s7 = inlined_call_operand.vmem [shape: f32[2,1,96], index: 7, kind: input, shape index: {}]   ;;  %s2976_s8 = inlined_call_operand.vmem [shape: f32[2,32,64], index: 8, kind: input, shape index: {}]   ;;  %s2977_s9 = inlined_call_operand.vmem [shape: f32[1,64], index: 9, kind: input, shape index: {}]   ;;  %s2978_s10 = inlined_call_operand.vmem [shape: f32[64,256], index: 10, kind: input, shape index: {}]   ;;  %s2979_s11 = inlined_call_operand.vmem [shape: f32[1,256], index: 11, kind: input, shape index: {}]   ;;  %s2980_s12 = inlined_call_operand.vmem [shape: f32[256,64], index: 12, kind: input, shape index: {}]   ;;  %s2981_s13 = inlined_call_operand.vmem [shape: f32[1,64], index: 13, kind: input, shape index: {}]   ;;  %s2982_s14 = inlined_call_operand.hbm [shape: f32[4,8,64], index: 14, kind: output, shape index: {}]  }
   0x1   :  { %2995 = sst [smem:[#allocation19_spill]] %s2972_s4 }
   0x2   :  { %2996 = sst [smem:[#allocation20_spill]] %s2973_s5 }
   0x3   :  { %2997 = sst [smem:[#allocation21_spill]] %s2976_s8 }
   0x4   :  { %2998 = sst [smem:[#allocation22_spill]] %s2978_s10 }
   0x5   :  { %2999 = sst [smem:[#allocation23_spill]] %s2981_s13 }
   0x6   :  { %3000 = sst [smem:[#allocation24_spill]] %s2982_s14 }
   0x7   :  { %19 = vsyncpa [#allocation6], 0 }
   0x8   :  { %21 = vsyncpa [#allocation6 + $0x1], 0  ;;  %s2595_s29 = smov 0   ;;  %s2597_s30 = smov 0  }
   0x9   :  { %s2599_s15 = smov 0   ;;  %s2601_s16 = smov 0  }
   0xa   :  { %s2603_s17 = smov 0   ;;  %s2605_s18 = smov 0  }
   0xb   :  { %s2607_s19 = smov 0   ;;  %s2609_s20 = smov 0  }
   0xc   :  { %s2611_s21 = smov 0   ;;  %s2613_s22 = smov 0  }
   0xd LB: > { %3001 = sst [smem:[#allocation8_spill]] %s2467_s29  ;;  %s1945_s23 = sadd.s32 4294967295, %s2503_s22   ;;  %s2503_s22 = sphi %s2613_s22, %s27_s22   ;;  %s2499_s21 = sphi %s2611_s21, %s3033_s21   ;;  %s2495_s20 = sphi %s2609_s20, %s3032_s20   ;;  %s2491_s19 = sphi %s2607_s19, %s3036_s19   ;;  %s2487_s18 = sphi %s2605_s18, %s3030_s18   ;;  %s2483_s17 = sphi %s2603_s17, %s3029_s17   ;;  %s2479_s16 = sphi %s2601_s16, %s3028_s16   ;;  %s2475_s15 = sphi %s2599_s15, %s3027_s15   ;;  %s2471_s30 = sphi %s2597_s30, %s3035_s30   ;;  %s2467_s29 = sphi %s2595_s29, %s3034_s29  }
   0xe   : > { %3002 = sst [smem:[#allocation9_spill]] %s2475_s15  ;;  %s1946_s24 = sadd.s32 4294967294, %s2503_s22  }
   0xf   : > { %3003 = sst [smem:[#allocation10_spill]] %s2483_s17  ;;  %s36_s25 = sadd.s32 1, %s2495_s20 }
  0x10   : > { %3004 = sst [smem:[#allocation11_spill]] %s2495_s20  ;;  %s39_s26 = sadd.s32 1, %s2499_s21 }
  0x11   : > { %3005 = sst [smem:[#allocation12_spill]] %s2499_s21  ;;  %p37_p0 = scmp.ge.s32.totalorder %s36_s25, 2 }
  0x12   : > { %3006 = sst [smem:[#allocation13_spill]] %s2503_s22  ;;  %s261_s27 = sadd.s32 1, %s2483_s17 }
  0x13   : > { %p268_p1 = scmp.ne.s32.totalorder %s2483_s17, %s2479_s16  ;;  %p269_p2 = scmp.eq.s32.totalorder %s2503_s22, 0 }
  0x14   : > { %s3038_s25 = smov (%p37_p0, %s36_s25), 0  ;;  %s3040_s26 = smov (!%p37_p0, %s39_s26), %s2499_s21 }
  0x15   : > { %3007 = sst [smem:[#allocation14_spill]] %s3038_s25  ;;  %s258_s28 = ssub.s32 %s2495_s20, %s3038_s25 }
  0x16   : > { %p2658_p3 = por %p269_p2, %p268_p1  ;;  %p41_p4 = scmp.ge.s32.totalorder %s3040_s26, 2 }
  0x17   : > { %p259_p5 = scmp.eq.s32.totalorder %s258_s28, 0  ;;  %s360_s13 = sadd.s32 1, %s2475_s15 }
  0x18   : > { %p370_p6 = scmp.ne.s32.totalorder %s2475_s15, %s2471_s30  ;;  %s3042_s26 = smov (%p41_p4, %s3040_s26), 0 }
  0x19   : > { %3009 = sst [smem:[#allocation15_spill]] %s3042_s26  ;;  %s357_s4 = ssub.s32 %s2499_s21, %s3042_s26 }
  0x1a   : > { %s2668_s5 = scalar_select %p259_p5, %s2483_s17, %s261_s27  }
  0x1b   : > { %p371_p7 = scmp.eq.s32.totalorder %s1945_s23, 3  ;;  %p358_p8 = scmp.eq.s32.totalorder %s357_s4, 0 }
  0x1c   : > { %3010 = sst [smem:[#allocation16_spill]] %s2668_s5  ;;  %p376_p9 = scmp.ne.s32.totalorder %s2471_s30, %s2467_s29 }
  0x1d   : > { %p2674_p10 = por %p371_p7, %p370_p6  ;;  %p377_p11 = scmp.eq.s32.totalorder %s1946_s24, 3 }
  0x1e   : > { %s2679_s25 = scalar_select %p358_p8, %s2475_s15, %s360_s13  }
  0x1f   : > { %p2681_p12 = por %p377_p11, %p376_p9  ;;  %p1948_p13 = scmp.ge.s32.totalorder %s2503_s22, 4 }
  0x20   : > { %3012 = sst [smem:[#allocation17_spill]] %s2679_s25 }
  0x21   : > { %s3013_s28 = scalar_select %p2681_p12, 1, 0 }
  0x22   : > { %423 = sbr.rel (%p1948_p13) target bundleno = 55 (0x37), region = 56 }
  0x23   : > { %3014 = sst [smem:[#allocation18_spill]] %s3013_s28 }
  0x29   : > { %435 = sbr.rel (!%p2658_p3) target bundleno = 55 (0x37), region = 64  ;;  %s437_s4 = sand.u32 (%p2658_p3), 1, %s2483_s17  }
  0x2a   : > { %s1950_s23 = sshll.u32 (%p2658_p3), %s2495_s20, 3  ;;  %s1949_s27 = sshll.u32 (%p2658_p3), %s437_s4, 6 }
  0x2b   : > { %s3015_s10 = sld [smem:[#allocation22_spill]] (%p2658_p3)  ;;  %s439_s24 = scalar_lea.vmem (%p2658_p3), [#allocation4], %s1949_s27 }
  0x31   : > { %s441_s13 = scalar_lea.vmem %s3015_s10, %s1950_s23 }
  0x32   : > { %v483_v0 = vld [vmem:[%s441_s13] sm:$0xff]  ;;  %v485_v1 = vld [vmem:[%s441_s13 + $0x10] sm:$0xff] }
  0x33   : > { %v487_v2 = vld [vmem:[%s441_s13 + $0x20] sm:$0xff]  ;;  %484 = vst [vmem:[%s439_s24] sm:$0xff] %v483_v0  ;;  %486 = vst [vmem:[%s439_s24 + $0x8] sm:$0xff] %v485_v1  ;;  %v489_v3 = vld [vmem:[%s441_s13 + $0x30] sm:$0xff] }
  0x34   : > { %488 = vst [vmem:[%s439_s24 + $0x10] sm:$0xff] %v487_v2  ;;  %v491_v4 = vld [vmem:[%s441_s13 + $0x40] sm:$0xff]  ;;  %v493_v5 = vld [vmem:[%s441_s13 + $0x50] sm:$0xff]  ;;  %490 = vst [vmem:[%s439_s24 + $0x18] sm:$0xff] %v489_v3 }
  0x35   : > { %492 = vst [vmem:[%s439_s24 + $0x20] sm:$0xff] %v491_v4  ;;  %494 = vst [vmem:[%s439_s24 + $0x28] sm:$0xff] %v493_v5  ;;  %v495_v6 = vld [vmem:[%s441_s13 + $0x60] sm:$0xff]  ;;  %v497_v7 = vld [vmem:[%s441_s13 + $0x70] sm:$0xff] }
  0x36   : > { %496 = vst [vmem:[%s439_s24 + $0x30] sm:$0xff] %v495_v6  ;;  %498 = vst [vmem:[%s439_s24 + $0x38] sm:$0xff] %v497_v7 }
  0x37 PF: > { %p1951_p0 = scmp.ge.s32.totalorder %s2503_s22, 1  ;;  %p518_p1 = scmp.lt.s32.totalorder %s2503_s22, 5 }
  0x39   : > { %p519_p2 = pnand %p1951_p0, %p518_p1 }
  0x3a   : > { %s525_s14 = sand.u32 (!%p519_p2), 1, %s2479_s16   ;;  %s2989_s21 = sand.u32 (!%p519_p2), 1, %s2471_s30  }
  0x3b   : > { %522 = sbr.rel (%p519_p2) target bundleno = 2890 (0xb4a), region = 110  ;;  %s1952_s26 = sshll.u32 (!%p519_p2), %s525_s14, 6 }
  0x3c   : > { %s1953_s4 = sshll.u32 (!%p519_p2), %s2989_s21, 4  ;;  %s1954_s23 = sshll.u32 (!%p519_p2), %s2491_s19, 1 }
  0x3d   : > { %p589_p3 = scmp.lt.s32.totalorder (!%p519_p2), %s2487_s18, 1  ;;  %p584_p4 = scmp.lt.s32.totalorder (!%p519_p2), %s1954_s23, 3 }
  0x3e   : > { %s1956_s27 = sshll.u32 (!%p519_p2), %s2487_s18, 4  ;;  %s2717_s29 = scalar_lea.vmem (!%p519_p2), [#allocation4], %s1952_s26 }
  0x3f   : > { %p593_p5 = scmp.lt.s32.totalorder (!%p519_p2), %s1956_s27, 31  ;;  %s2719_s22 = scalar_lea.vmem (!%p519_p2), [#allocation5], %s1953_s4 }
  0x40   : > { %p1958_p6 = scmp.ne.s32.totalorder (!%p519_p2), %s2487_s18, 0 }
  0x42   : > { %s2703_s13 = scalar_select %p589_p3, %s2487_s18, 1 }
  0x43   : > { %s3044_s23 = smov (!%p584_p4, %s1954_s23), 3  ;;  %s3046_s27 = smov (!%p593_p5, %s1956_s27), 31 }
  0x44   : > { %s591_s20 = scalar_lea.vmem %s2979_s11, %s2703_s13  ;;  %s1955_s5 = sshll.u32 %s3044_s23, 3  ;;  %vm607_vm0 = vcmask (!%p1958_p6), 523264   ;;  %v1961_v9 = vld [vmem:[%s2977_s9] ss:$0 sm:$0xff] (!%p1958_p6) }
  0x45   : > { %s587_s14 = scalar_lea.vmem %s2968_s0, %s1955_s5  ;;  %s1957_s21 = sshll.u32 %s3046_s27, 3  ;;  %v2734_v25 = vld [vmem:[%s2969_s1] sm:$0xff] (!%p1958_p6) }
  0x46   : > { %s2715_s28 = scalar_lea.vmem %s2980_s12, %s1957_s21  ;;  %602 = sbr.rel (%p1958_p6) target bundleno = 2371 (0x943), region = 118  ;;  %v603_v8 = vld [vmem:[%s587_s14] sm:$0xff] (!%p1958_p6)  ;;  %v604_v10 = vld [vmem:[%s587_s14 + $0x8] sm:$0xff] (!%p1958_p6) }
  0x47   : > { %v608_v11 = vsel (!%p1958_p6), %vm607_vm0, %v603_v8, 0.0  ;;  %v659_v12 = vadd.f32 (!%p1958_p6), %v1961_v9, %v603_v8  ;;  %v660_v13 = vadd.f32 (!%p1958_p6), %v1961_v9, %v604_v10  ;;  %v611_v14 = vsel (!%p1958_p6), %vm607_vm0, %v604_v10, 0.0  ;;  %v1959_v33 = vld [vmem:[%s2970_s2] ss:$0 sm:$0xff] (!%p1958_p6)  ;;  %s2746_s4 = smov (!%p1958_p6), 0  }
  0x48   : > { %609 = vadd.xlane.f32.xlu0 (!%p1958_p6), %v608_v11  ;;  %v1960_v35 = vld [vmem:[%s2971_s3] ss:$0 sm:$0xff] (!%p1958_p6) }
  0x49   : > { %661 = vst.msk [vmem:[#allocation3] sm:$0xff] (!%p1958_p6), %vm607_vm0, %v659_v12  ;;  %662 = vst.msk [vmem:[#allocation3 + $0x8] sm:$0xff] (!%p1958_p6), %vm607_vm0, %v660_v13 }
  0x4c   : > { %612 = vadd.xlane.f32.xlu0 (!%p1958_p6), %v611_v14 }
  0xd5   : > { %v610_v15 = vpop.xlane.xlu0 %609 }
  0xd6   : > { %v615_v16 = vmul.f32 0.015625, %v610_v15 }
  0xd8   : > { %v617_v17 = vsub.f32 %v603_v8, %v615_v16 }
  0xd9   : > { %v613_v18 = vpop.xlane.xlu0 %612 }
  0xda   : > { %v616_v19 = vmul.f32 0.015625, %v613_v18  ;;  %v619_v20 = vmul.f32 %v617_v17, %v617_v17 }
  0xdc   : > { %v618_v21 = vsub.f32 %v604_v10, %v616_v19  ;;  %v621_v22 = vsel %vm607_vm0, %v619_v20, 0.0 }
  0xdd   : > { %622 = vadd.xlane.f32.xlu1 %v621_v22 }
  0xde   : > { %v620_v23 = vmul.f32 %v618_v21, %v618_v21 }
  0xe0   : > { %v624_v24 = vsel %vm607_vm0, %v620_v23, 0.0 }
  0xe1   : > { %625 = vadd.xlane.f32.xlu1 %v624_v24 }
 0x16a   : > { %v623_v26 = vpop.xlane.xlu1 %622 }
 0x16b   : > { %v627_v27 = vmul.f32 0.015625, %v623_v26 }
 0x16d   : > { %v629_v28 = vadd.f32 1e-05, %v627_v27 }
 0x16e   : > { %v626_v29 = vpop.xlane.xlu1 %625 }
 0x16f   : > { %2357 = vrsqrt.f32 %v629_v28  ;;  %v628_v30 = vmul.f32 0.015625, %v626_v29 }
 0x171   : > { %v630_v31 = vadd.f32 1e-05, %v628_v30 }
 0x173   : > { %2359 = vrsqrt.f32 %v630_v31 }
 0x179   : > { %v2358_v32 = vpop.eup %2357 }
 0x17a   : > { %v633_v34 = vmul.f32 %v2358_v32, %v617_v17 }
 0x17c   : > { %v641_v36 = vmul.f32 %v1959_v33, %v633_v34 }
 0x17d   : > { %v2360_v37 = vpop.eup %2359 }
 0x17e   : > { %v2742_v38 = vadd.f32 %v1960_v35, %v641_v36  ;;  %v634_v39 = vmul.f32 %v2360_v37, %v618_v21 }
 0x180   : > { %v642_v40 = vmul.f32 %v1959_v33, %v634_v39 }
 0x182   : > { %v2744_v41 = vadd.f32 %v1960_v35, %v642_v40 }
 0x183 LB: >> { %2072 = vmatprep.mubr.msk.f32.mxu0 %vm607_vm0, %v2742_v38  ;;  %s1962_s27 = sshll.u32 %s2507_s4, 6  ;;  %v2509_v54 = vmov 0.0   ;;  %vm2510_vm1 = vmmov 0   ;;  %s679_s5 = scalar_lea.vmem %s2975_s7, %s2507_s4  ;;  %vm771_vm2 = vcmask 130048   ;;  %vm923_vm3 = vcmask 64512   ;;  %s2507_s4 = sphi %s2746_s4, %s668_s4  }
 0x184   : >> { %s670_s14 = scalar_lea.vmem %s2974_s6, %s1962_s27  ;;  %2075 = vmatprep.subr.mxu1 %v2509_v54  ;;  %2077 = vmatprep.mubr.msk.f32.mxu1 %vm2510_vm1, %v2509_v54  ;;  %v1963_v55 = vld [vmem:[%s679_s5] ss:$0 sm:$0xff]  ;;  %s2511_s15 = smov 96   ;;  %vm1446_vm4 = vcmask 261120  }
 0x185   : >> { %v671_v42 = vld [vmem:[%s670_s14] sm:$0xff]  ;;  %v672_v43 = vld [vmem:[%s670_s14 + $0x8] sm:$0xff]  ;;  %v673_v44 = vld [vmem:[%s670_s14 + $0x10] sm:$0xff]  ;;  %s2512_s17 = smov 64   ;;  %s2513_s25 = smov 80  }
 0x186   : >> { %v2180_v45 = vpack.c.bf16 %v672_v43, %v671_v42  ;;  %v674_v46 = vld [vmem:[%s670_s14 + $0x18] sm:$0xff]  ;;  %v675_v48 = vld [vmem:[%s670_s14 + $0x20] sm:$0xff]  ;;  %v676_v49 = vld [vmem:[%s670_s14 + $0x28] sm:$0xff]  ;;  %s2514_s21 = smov 112   ;;  %s2515_s26 = smov 48  }
 0x187   : >> { %v2184_v47 = vpack.c.bf16 %v674_v46, %v673_v44  ;;  %v2188_v50 = vpack.c.bf16 %v676_v49, %v675_v48  ;;  %v677_v51 = vld [vmem:[%s670_s14 + $0x30] sm:$0xff]  ;;  %v678_v52 = vld [vmem:[%s670_s14 + $0x38] sm:$0xff]  ;;  %s1978_s27 = sshll.u32 %s2507_s4, 5  ;;  %s3016_s14 = sld [smem:[#allocation21_spill]] }
 0x188   : >> { %2181 = vmatprep.subr.bf16.mxu0 %v2180_v45  ;;  %v2192_v53 = vpack.c.bf16 %v678_v52, %v677_v51  ;;  %s2516_s23 = smov 16   ;;  %s668_s4 = sadd.s32 1, %s2507_s4  }
 0x189   : >> { %2183 = vmatpush3.bf16.msra.mxu0 %v2180_v45  ;;  %p665_p7 = scmp.ge.s32.totalorder %s668_s4, 2  }
 0x18a   : >> { %2185 = vmatprep.subr.bf16.mxu0 %v2184_v47 }
 0x18d   : >> { %2187 = vmatpush3.bf16.msra.mxu0 %v2184_v47  ;;  %s1441_s10 = scalar_lea.vmem %s3016_s14, %s1978_s27 }
 0x18e   : >> { %2189 = vmatprep.subr.bf16.mxu0 %v2188_v50  ;;  %v1442_v49 = vld [vmem:[%s1441_s10] sm:$0xff] }
 0x191   : >> { %2191 = vmatpush3.bf16.msra.mxu0 %v2188_v50  ;;  %v1443_v50 = vld [vmem:[%s1441_s10 + $0x8] sm:$0xff] }
 0x192   : >> { %2193 = vmatprep.subr.bf16.mxu0 %v2192_v53  ;;  %v2196_v51 = vpack.c.bf16 %v1443_v50, %v1442_v49 }
 0x195   : >> { %2195 = vmatpush3.bf16.msra.mxu0 %v2192_v53  ;;  %v1444_v53 = vld [vmem:[%s1441_s10 + $0x10] sm:$0xff] }
 0x196   : >> { %2105 = vmatprep.subr.mxu0 %v2509_v54 }
 0x198   : >> { %2073 = vmatmul.mubr.msk.f32.vlgmr.msra.gmra.mrb[0].mxu0 %vm607_vm0, %v2744_v41 }
 0x199   : >> { %2107 = vmatprep.mubr.msk.f32.mxu0 %vm2510_vm1, %v2509_v54 }
 0x26b   : >> { %v2074_v56 = vpop.f32.mrb[0].mxu0 }
 0x26c   : >> { %v759_v57 = vpop.f32.mrb[1].mxu0  ;;  %v2772_v59 = vadd.f32 %v2074_v56, %v1963_v55 }
 0x26d   : >> { %v2769_v58 = vadd.f32 %v1963_v55, %v759_v57 }
 0x26f   : >> { %769 = vrot.lane.b32.xlu0 %v2769_v58, %s2511_s15 }
 0x273   : >> { %847 = vrot.lane.b32.xlu0 %v2772_v59, %s2511_s15  ;;  %s3017_s15 = sld [smem:[#allocation19_spill]] (%p665_p7) }
 0x277   : >> { %942 = vrot.lane.b32.xlu0 %v2769_v58, %s2512_s17 }
 0x27b   : >> { %1100 = vrot.lane.b32.xlu0 %v2769_v58, %s2513_s25 }
 0x27f   : >> { %1098 = vrot.lane.b32.xlu0 %v2769_v58, %s2514_s21 }
 0x283   : >> { %1178 = vrot.lane.b32.xlu0 %v2772_v59, %s2513_s25 }
 0x287   : >> { %1176 = vrot.lane.b32.xlu0 %v2772_v59, %s2514_s21  ;;  %s3018_s21 = sld [smem:[#allocation20_spill]] (%p665_p7) }
 0x2e1   : >> { %v770_v60 = vpop.permute.xlu0 %769 }
 0x2e2   : >> { %2076 = vmatpush3.xpose.msk.msra.mxu1 %vm771_vm2, %v770_v60 }
 0x2e3   : >> { %2080 = vmatprep.subr.mxu1 %v2509_v54 }
 0x2e5   : >> { %2078 = vmatmul.mubr.msk.f32.vlgmr.msra.gmra.mrb[0].mxu1 %vm771_vm2, %v2769_v58  ;;  %v848_v61 = vpop.permute.xlu0 %847 }
 0x2e6   : >> { %2081 = vmatpush3.xpose.msk.msra.mxu1 %vm771_vm2, %v848_v61  ;;  %2082 = vmatprep.mubr.msk.f32.mxu1 %vm2510_vm1, %v2509_v54 }
 0x2e7   : >> { %2085 = vmatprep.subr.mxu1 %v2509_v54 }
 0x2e9   : >> { %2083 = vmatmul.mubr.msk.f32.vlgmr.msra.gmra.mrb[2].mxu1 %vm771_vm2, %v2772_v59  ;;  %v943_v62 = vpop.permute.xlu0 %942 }
 0x2ea   : >> { %2086 = vmatpush3.msra.mxu1 %v943_v62  ;;  %2087 = vmatprep.mubr.msk.f32.mxu1 %vm2510_vm1, %v2509_v54 }
 0x2eb   : >> { %2090 = vmatprep.subr.mxu1 %v2509_v54 }
 0x2ed   : >> { %v1101_v13 = vpop.permute.xlu0 %1100 }
 0x2f1   : >> { %v1099_v16 = vpop.permute.xlu0 %1098 }
 0x2f5   : >> { %v1179_v18 = vpop.permute.xlu0 %1178 }
 0x2f9   : >> { %v1177_v19 = vpop.permute.xlu0 %1176 }
 0x3b8   : >> { %v842_v63 = vpop.f32.mrb[0].mxu1 }
 0x3b9   : >> { %v843_v0 = vadd.f32 %v842_v63, %v2734_v25  ;;  %v2079_v1 = vpop.f32.mrb[1].mxu1 }
 0x3bb   : >> { %v924_v2 = vsel %vm923_vm3, %v843_v0, -inf }
 0x3bc   : >> { %925 = vmax.xlane.f32.xlu1 %v924_v2  ;;  %v919_v3 = vpop.f32.mrb[2].mxu1 }
 0x3bd   : >> { %v920_v4 = vadd.f32 %v919_v3, %v2734_v25  ;;  %v2084_v5 = vpop.f32.mrb[3].mxu1 }
 0x3bf   : >> { %v927_v6 = vsel %vm923_vm3, %v920_v4, -inf }
 0x3c0   : >> { %928 = vmax.xlane.f32.xlu1 %v927_v6 }
 0x3d1   : >> { %1018 = vrot.lane.b32.xlu1 %v2772_v59, %s2512_s17 }
 0x449   : >> { %v926_v7 = vpop.xlane.xlu1 %925 }
 0x44a   : >> { %v930_v8 = vsub.f32 %v843_v0, %v926_v7 }
 0x44c   : >> { %v932_v9 = vmul.f32 1.442695, %v930_v8 }
 0x44d   : >> { %v929_v10 = vpop.xlane.xlu1 %928 }
 0x44e   : >> { %2361 = vpow2.f32 %v932_v9  ;;  %v931_v11 = vsub.f32 %v920_v4, %v929_v10 }
 0x450   : >> { %v934_v12 = vmul.f32 1.442695, %v931_v11  ;;  %v1439_v11 = vld [vmem:[#allocation3 + $0x8] sm:$0xff] }
 0x451   : >> { %v1019_v15 = vpop.permute.xlu1 %1018 }
 0x452   : >> { %2363 = vpow2.f32 %v934_v12  ;;  %v1438_v12 = vld [vmem:[#allocation3] sm:$0xff] }
 0x458   : >> { %v2362_v14 = vpop.eup %2361 }
 0x459   : >> { %2088 = vmatmul.mubr.msk.f32.vlgmr.msra.gmra.mrb[4].mxu1 %vm923_vm3, %v2362_v14  ;;  %v936_v48 = vsel %vm923_vm3, %v2362_v14, 0.0 }
 0x45a   : >> { %2091 = vmatpush3.msra.mxu1 %v1019_v15  ;;  %2092 = vmatprep.mubr.msk.f32.mxu1 %vm2510_vm1, %v2509_v54 }
 0x45b   : >> { %2095 = vmatprep.subr.mxu1 %v2509_v54 }
 0x45c   : >> { %v2364_v17 = vpop.eup %2363 }
 0x45d   : >> { %2093 = vmatmul.mubr.msk.f32.vlgmr.msra.gmra.mrb[6].mxu1 %vm923_vm3, %v2364_v17  ;;  %v939_v46 = vsel %vm923_vm3, %v2364_v17, 0.0 }
 0x45e   : >> { %2097 = vmatprep.mubr.msk.f32.mxu1 %vm2510_vm1, %v2509_v54 }
 0x461   : >> { %2096 = vmatpush3.xpose.msk.msra.mxu1 %vm771_vm2, %v1101_v13 }
 0x462   : >> { %2100 = vmatprep.subr.mxu1 %v2509_v54 }
 0x464   : >> { %2098 = vmatmul.mubr.msk.f32.vlgmr.msra.gmra.mrb[8].mxu1 %vm771_vm2, %v1099_v16 }
 0x465   : >> { %2101 = vmatpush3.xpose.msk.msra.mxu1 %vm771_vm2, %v1179_v18  ;;  %2102 = vmatprep.mubr.msk.f32.mxu1 %vm2510_vm1, %v2509_v54 }
 0x466   : >> { %2110 = vmatprep.subr.mxu1 %v2509_v54 }
 0x468   : >> { %2103 = vmatmul.mubr.msk.f32.vlgmr.msra.gmra.mrb[10].mxu1 %vm771_vm2, %v1177_v19 }
 0x469   : >> { %2112 = vmatprep.mubr.msk.f32.mxu1 %vm2510_vm1, %v2509_v54  ;;  %v1445_v54 = vld [vmem:[%s1441_s10 + $0x18] sm:$0xff] }
 0x46a   : >> { %v2200_v55 = vpack.c.bf16 %v1445_v54, %v1444_v53 }
 0x52c   : >> { %v2817_v20 = vpop.f32.mrb[4].mxu1 }
 0x52d   : >> { %v2089_v21 = vpop.f32.mrb[5].mxu1 }
 0x530   : >> { %v2819_v22 = vpop.f32.mrb[6].mxu1 }
 0x531   : >> { %v2094_v23 = vpop.f32.mrb[7].mxu1 }
 0x537   : >> { %v1172_v24 = vpop.f32.mrb[8].mxu1 }
 0x538   : >> { %v1173_v26 = vadd.f32 %v1172_v24, %v2734_v25  ;;  %v2099_v27 = vpop.f32.mrb[9].mxu1 }
 0x53a   : >> { %v1254_v28 = vsel %vm923_vm3, %v1173_v26, -inf }
 0x53b   : >> { %1255 = vmax.xlane.f32.xlu1 %v1254_v28  ;;  %v1250_v29 = vpop.f32.mrb[10].mxu1 }
 0x53c   : >> { %v1251_v30 = vadd.f32 %v1250_v29, %v2734_v25  ;;  %v2104_v31 = vpop.f32.mrb[11].mxu1 }
 0x53e   : >> { %v1257_v32 = vsel %vm923_vm3, %v1251_v30, -inf }
 0x53f   : >> { %1258 = vmax.xlane.f32.xlu0 %v1257_v32 }
 0x54c   : >> { %1348 = vrot.lane.b32.xlu1 %v2772_v59, %s2515_s26 }
 0x555   : >> { %1272 = vrot.lane.b32.xlu0 %v2769_v58, %s2515_s26 }
 0x5c8   : >> { %v1256_v33 = vpop.xlane.xlu1 %1255 }
 0x5c9   : >> { %v1260_v34 = vsub.f32 %v1173_v26, %v1256_v33 }
 0x5cb   : >> { %v1262_v35 = vmul.f32 1.442695, %v1260_v34 }
 0x5cc   : >> { %v1349_v36 = vpop.permute.xlu1 %1348  ;;  %v1259_v37 = vpop.xlane.xlu0 %1258 }
 0x5cd   : >> { %2365 = vpow2.f32 %v1262_v35  ;;  %v1261_v39 = vsub.f32 %v1251_v30, %v1259_v37  ;;  %2111 = vmatpush3.msra.mxu1 %v1349_v36  ;;  %v1981_v36 = vld [vmem:[%s3017_s15] ss:$0 sm:$0xff] (%p665_p7) }
 0x5cf   : >> { %v1264_v40 = vmul.f32 1.442695, %v1261_v39  ;;  %v1982_v39 = vld [vmem:[%s3018_s21] ss:$0 sm:$0xff] (%p665_p7) }
 0x5d0   : >> { %v1273_v42 = vpop.permute.xlu0 %1272 }
 0x5d1   : >> { %2367 = vpow2.f32 %v1264_v40  ;;  %2106 = vmatpush3.msra.mxu0 %v1273_v42 }
 0x5d2   : >> { %2197 = vmatprep.subr.bf16.mxu0 %v2196_v51 }
 0x5d7   : >> { %v2366_v43 = vpop.eup %2365 }
 0x5d8   : >> { %2108 = vmatmul.mubr.msk.f32.vlgmr.msra.gmra.mrb[2].mxu0 %vm923_vm3, %v2366_v43  ;;  %v1266_v44 = vsel %vm923_vm3, %v2366_v43, 0.0 }
 0x5d9   : >> { %1267 = vadd.xlane.f32.xlu1 %v1266_v44  ;;  %2199 = vmatpush3.bf16.msra.mxu0 %v2196_v51 }
 0x5da   : >> { %2201 = vmatprep.subr.bf16.mxu0 %v2200_v55 }
 0x5db   : >> { %v2368_v45 = vpop.eup %2367 }
 0x5dc   : >> { %2113 = vmatmul.mubr.msk.f32.vlgmr.msra.gmra.mrb[12].mxu1 %vm923_vm3, %v2368_v45  ;;  %v1269_v47 = vsel %vm923_vm3, %v2368_v45, 0.0 }
 0x5dd   : >> { %940 = vadd.xlane.f32.xlu1 %v939_v46  ;;  %1270 = vadd.xlane.f32.xlu0 %v1269_v47 }
 0x5de   : >> { %2203 = vmatpush3.bf16.msra.mxu0 %v2200_v55 }
 0x5e1   : >> { %937 = vadd.xlane.f32.xlu0 %v936_v48 }
 0x666   : >> { %v1268_v52 = vpop.xlane.xlu1 %1267 }
 0x667   : >> { %2369 = vrcp.f32 %v1268_v52 }
 0x66a   : >> { %v1271_v56 = vpop.xlane.xlu0 %1270  ;;  %v941_v2 = vpop.xlane.xlu1 %940 }
 0x66b   : >> { %2371 = vrcp.f32 %v1271_v56 }
 0x66e   : >> { %v938_v1 = vpop.xlane.xlu0 %937 }
 0x66f   : >> { %2373 = vrcp.f32 %v938_v1 }
 0x670   : >> { %2375 = vrcp.f32 %v941_v2 }
 0x671   : >> { %v2370_v57 = vpop.eup %2369 }
 0x675   : >> { %v2372_v61 = vpop.eup %2371 }
 0x679   : >> { %v2374_v3 = vpop.eup %2373 }
 0x67a   : >> { %v1096_v4 = vmul.f32 %v2374_v3, %v2817_v20  ;;  %v2376_v5 = vpop.eup %2375 }
 0x67b   : >> { %v1097_v8 = vmul.f32 %v2376_v5, %v2819_v22 }
 0x6ab   : >> { %v1344_v58 = vpop.f32.mrb[2].mxu0 }
 0x6ac   : >> { %v1426_v59 = vmul.f32 %v2370_v57, %v1344_v58  ;;  %v2109_v60 = vpop.f32.mrb[3].mxu0 }
 0x6ae   : >> { %1430 = vrot.lane.b32.xlu0 %v1426_v59, %s2516_s23 }
 0x6af   : >> { %v1420_v62 = vpop.f32.mrb[12].mxu1 }
 0x6b0   : >> { %v1427_v63 = vmul.f32 %v2372_v61, %v1420_v62  ;;  %v2114_v0 = vpop.f32.mrb[13].mxu1 }
 0x6b2   : >> { %1432 = vrot.lane.b32.xlu1 %v1427_v63, %s2516_s23 }
 0x720   : >> { %v1431_v6 = vpop.permute.xlu0 %1430 }
 0x721   : >> { %v1436_v7 = vsel %vm771_vm2, %v1096_v4, %v1431_v6 }
 0x722   : >> { %2123 = vmatprep.mubr.msk.f32.mxu0 %vm1446_vm4, %v1436_v7 }
 0x724   : >> { %v1433_v9 = vpop.permute.xlu1 %1432 }
 0x725   : >> { %v1437_v10 = vsel %vm771_vm2, %v1097_v8, %v1433_v9 }
 0x726   : >> { %2124 = vmatmul.mubr.msk.f32.vlgmr.msra.gmra.mrb[4].mxu0 %vm1446_vm4, %v1437_v10 }
 0x7f7   : > { %667 = sbr.rel (!%p665_p7) target bundleno = 387 (0x183), region = 181 }
 0x7f9   : >> { %v2125_v13 = vpop.f32.mrb[4].mxu0 }
 0x7fa   : >> { %v1529_v14 = vadd.f32 %v2125_v13, %v1439_v11  ;;  %v1519_v15 = vpop.f32.mrb[5].mxu0 }
 0x7fb   : >> { %v1528_v16 = vadd.f32 %v1519_v15, %v1438_v12 }
 0x7fc   : >> { %1531 = vst.msk [vmem:[#allocation3 + $0x8] sm:$0xff] %vm607_vm0, %v1529_v14 }
 0x7fd   : >> { %1530 = vst.msk [vmem:[#allocation3] sm:$0xff] %vm607_vm0, %v1528_v16 }
 0x803   : > { %v1533_v18 = vld [vmem:[#allocation3 + $0x8] sm:$0xff] }
 0x804   : > { %v1532_v17 = vld [vmem:[#allocation3] sm:$0xff]  ;;  %v1539_v20 = vsel %vm607_vm0, %v1533_v18, 0.0 }
 0x805   : > { %v1536_v19 = vsel %vm607_vm0, %v1532_v17, 0.0 }
 0x806   : > { %1537 = vadd.xlane.f32.xlu0 %v1536_v19 }
 0x80a   : > { %1540 = vadd.xlane.f32.xlu0 %v1539_v20 }
 0x893   : > { %v1538_v21 = vpop.xlane.xlu0 %1537 }
 0x894   : > { %v1542_v22 = vmul.f32 0.015625, %v1538_v21 }
 0x896   : > { %v1544_v23 = vsub.f32 %v1532_v17, %v1542_v22 }
 0x897   : > { %v1541_v24 = vpop.xlane.xlu0 %1540 }
 0x898   : > { %v1543_v26 = vmul.f32 0.015625, %v1541_v24  ;;  %v1546_v27 = vmul.f32 %v1544_v23, %v1544_v23 }
 0x89a   : > { %v1545_v28 = vsub.f32 %v1533_v18, %v1543_v26  ;;  %v1548_v29 = vsel %vm607_vm0, %v1546_v27, 0.0 }
 0x89b   : > { %1549 = vadd.xlane.f32.xlu1 %v1548_v29 }
 0x89c   : > { %v1547_v30 = vmul.f32 %v1545_v28, %v1545_v28 }
 0x89e   : > { %v1551_v25 = vsel %vm607_vm0, %v1547_v30, 0.0 }
 0x89f   : > { %1552 = vadd.xlane.f32.xlu1 %v1551_v25 }
 0x928   : > { %v1550_v38 = vpop.xlane.xlu1 %1549 }
 0x929   : > { %v1554_v41 = vmul.f32 0.015625, %v1550_v38 }
 0x92b   : > { %v1556_v31 = vadd.f32 1e-05, %v1554_v41 }
 0x92c   : > { %v1553_v32 = vpop.xlane.xlu1 %1552 }
 0x92d   : > { %2377 = vrsqrt.f32 %v1556_v31  ;;  %v1555_v33 = vmul.f32 0.015625, %v1553_v32 }
 0x92f   : > { %v1557_v34 = vadd.f32 1e-05, %v1555_v33 }
 0x931   : > { %2379 = vrsqrt.f32 %v1557_v34 }
 0x937   : > { %v2378_v35 = vpop.eup %2377 }
 0x938   : > { %v1560_v37 = vmul.f32 %v2378_v35, %v1544_v23 }
 0x93a   : > { %v1568_v40 = vmul.f32 %v1981_v36, %v1560_v37 }
 0x93b   : > { %v2380_v42 = vpop.eup %2379 }
 0x93c   : > { %v1576_v43 = vadd.f32 %v1982_v39, %v1568_v40  ;;  %v1561_v44 = vmul.f32 %v2380_v42, %v1545_v28 }
 0x93e   : > { %1578 = vst.msk [vmem:[#allocation2] sm:$0xff] %vm607_vm0, %v1576_v43  ;;  %v1569_v45 = vmul.f32 %v1981_v36, %v1561_v44 }
 0x940   : > { %v1577_v46 = vadd.f32 %v1982_v39, %v1569_v45 }
 0x942   : > { %1579 = vst.msk [vmem:[#allocation2 + $0x8] sm:$0xff] %vm607_vm0, %v1577_v46 }
 0x943 PF: > { %v1582_v47 = vld [vmem:[%s2717_s29] sm:$0xff]  ;;  %v1583_v48 = vld [vmem:[%s2717_s29 + $0x8] sm:$0xff]  ;;  %v1584_v49 = vld [vmem:[%s2717_s29 + $0x10] sm:$0xff]  ;;  %vm1597_vm5 = vcmask 523264   ;;  %p1988_p8 = scmp.ne.s32.totalorder %s2487_s18, 1 }
 0x944   : > { %v2204_v50 = vpack.c.bf16 %v1583_v48, %v1582_v47  ;;  %v1585_v51 = vld [vmem:[%s2717_s29 + $0x18] sm:$0xff]  ;;  %v1586_v53 = vld [vmem:[%s2717_s29 + $0x20] sm:$0xff]  ;;  %v1587_v54 = vld [vmem:[%s2717_s29 + $0x28] sm:$0xff]  ;;  %s3019_s13 = sld [smem:[#allocation23_spill]] (!%p1988_p8) }
 0x945   : > { %v2208_v52 = vpack.c.bf16 %v1585_v51, %v1584_v49  ;;  %v1580_v55 = vld [vmem:[#allocation2] sm:$0xff]  ;;  %v2212_v56 = vpack.c.bf16 %v1587_v54, %v1586_v53  ;;  %v1588_v57 = vld [vmem:[%s2717_s29 + $0x30] sm:$0xff]  ;;  %v1589_v58 = vld [vmem:[%s2717_s29 + $0x38] sm:$0xff] }
 0x946   : > { %2205 = vmatprep.subr.bf16.mxu0 %v2204_v50  ;;  %2142 = vmatprep.mubr.msk.f32.mxu0 %vm1597_vm5, %v1580_v55  ;;  %v2216_v59 = vpack.c.bf16 %v1589_v58, %v1588_v57  ;;  %v1697_v61 = vld [vmem:[%s2715_s28] sm:$0xff]  ;;  %v1698_v62 = vld [vmem:[%s2715_s28 + $0x8] sm:$0xff]  ;;  %v1699_v0 = vld [vmem:[%s2715_s28 + $0x10] sm:$0xff] }
 0x947   : > { %2207 = vmatpush3.bf16.msra.mxu0 %v2204_v50  ;;  %v2220_v63 = vpack.c.bf16 %v1698_v62, %v1697_v61  ;;  %v1700_v1 = vld [vmem:[%s2715_s28 + $0x18] sm:$0xff]  ;;  %v1701_v3 = vld [vmem:[%s2715_s28 + $0x20] sm:$0xff]  ;;  %v1702_v4 = vld [vmem:[%s2715_s28 + $0x28] sm:$0xff] }
 0x948   : > { %2209 = vmatprep.subr.bf16.mxu0 %v2208_v52  ;;  %v2224_v2 = vpack.c.bf16 %v1700_v1, %v1699_v0  ;;  %v2228_v5 = vpack.c.bf16 %v1702_v4, %v1701_v3  ;;  %v1703_v6 = vld [vmem:[%s2715_s28 + $0x30] sm:$0xff]  ;;  %v1704_v7 = vld [vmem:[%s2715_s28 + $0x38] sm:$0xff]  ;;  %v1705_v9 = vld [vmem:[%s2715_s28 + $0x40] sm:$0xff] }
 0x949   : > { %v1581_v60 = vld [vmem:[#allocation2 + $0x8] sm:$0xff]  ;;  %2221 = vmatprep.subr.bf16.mxu1 %v2220_v63  ;;  %v2232_v8 = vpack.c.bf16 %v1704_v7, %v1703_v6  ;;  %v1707_v12 = vld [vmem:[%s2715_s28 + $0x50] sm:$0xff]  ;;  %v1708_v13 = vld [vmem:[%s2715_s28 + $0x58] sm:$0xff] }
 0x94a   : > { %2223 = vmatpush3.bf16.msra.mxu1 %v2220_v63  ;;  %v1706_v10 = vld [vmem:[%s2715_s28 + $0x48] sm:$0xff]  ;;  %v2240_v14 = vpack.c.bf16 %v1708_v13, %v1707_v12  ;;  %v1709_v15 = vld [vmem:[%s2715_s28 + $0x60] sm:$0xff]  ;;  %v1711_v18 = vld [vmem:[%s2715_s28 + $0x70] sm:$0xff] }
 0x94b   : > { %2211 = vmatpush3.bf16.msra.mxu0 %v2208_v52  ;;  %2225 = vmatprep.subr.bf16.mxu1 %v2224_v2  ;;  %v2236_v11 = vpack.c.bf16 %v1706_v10, %v1705_v9  ;;  %v1710_v16 = vld [vmem:[%s2715_s28 + $0x68] sm:$0xff]  ;;  %v1712_v19 = vld [vmem:[%s2715_s28 + $0x78] sm:$0xff]  ;;  %v1983_v21 = vld [vmem:[%s591_s20] ss:$0 sm:$0xff] }
 0x94c   : > { %2213 = vmatprep.subr.bf16.mxu0 %v2212_v56  ;;  %v2244_v17 = vpack.c.bf16 %v1710_v16, %v1709_v15  ;;  %v2248_v20 = vpack.c.bf16 %v1712_v19, %v1711_v18  ;;  %v1696_v36 = vld [vmem:[#allocation3 + $0x8] sm:$0xff]  ;;  %v1695_v37 = vld [vmem:[#allocation3] sm:$0xff]  ;;  %v1989_v45 = vld [vmem:[%s3019_s13] ss:$0 sm:$0xff] (!%p1988_p8) }
 0x94e   : > { %2227 = vmatpush3.bf16.msra.mxu1 %v2224_v2 }
 0x94f   : > { %2215 = vmatpush3.bf16.msra.mxu0 %v2212_v56  ;;  %2229 = vmatprep.subr.bf16.mxu1 %v2228_v5 }
 0x950   : > { %2217 = vmatprep.subr.bf16.mxu0 %v2216_v59 }
 0x952   : > { %2231 = vmatpush3.bf16.msra.mxu1 %v2228_v5 }
 0x953   : > { %2219 = vmatpush3.bf16.msra.mxu0 %v2216_v59  ;;  %2233 = vmatprep.subr.bf16.mxu1 %v2232_v8 }
 0x956   : > { %2143 = vmatmul.mubr.msk.f32.vlgmr.msra.gmra.mrb[0].mxu0 %vm1597_vm5, %v1581_v60  ;;  %2235 = vmatpush3.bf16.msra.mxu1 %v2232_v8 }
 0x957   : > { %2237 = vmatprep.subr.bf16.mxu1 %v2236_v11 }
 0x95a   : > { %2239 = vmatpush3.bf16.msra.mxu1 %v2236_v11 }
 0x95b   : > { %2241 = vmatprep.subr.bf16.mxu1 %v2240_v14 }
 0x95e   : > { %2243 = vmatpush3.bf16.msra.mxu1 %v2240_v14 }
 0x95f   : > { %2245 = vmatprep.subr.bf16.mxu1 %v2244_v17 }
 0x962   : > { %2247 = vmatpush3.bf16.msra.mxu1 %v2244_v17 }
 0x963   : > { %2249 = vmatprep.subr.bf16.mxu1 %v2248_v20 }
 0x966   : > { %2251 = vmatpush3.bf16.msra.mxu1 %v2248_v20 }
 0xa29   : > { %v2144_v22 = vpop.f32.mrb[0].mxu0 }
 0xa2a   : > { %v1676_v23 = vadd.f32 %v2144_v22, %v1983_v21  ;;  %v1670_v24 = vpop.f32.mrb[1].mxu0 }
 0xa2b   : > { %v1671_v26 = vadd.f32 %v1983_v21, %v1670_v24 }
 0xa2c   : > { %v1987_v27 = vmul.f32 -1.702, %v1676_v23 }
 0xa2d   : > { %v1986_v28 = vmul.f32 -1.702, %v1671_v26 }
 0xa2e   : > { %v1685_v29 = vmul.f32 1.442695, %v1987_v27 }
 0xa2f   : > { %v1683_v30 = vmul.f32 1.442695, %v1986_v28 }
 0xa30   : > { %2381 = vpow2.f32 %v1685_v29 }
 0xa31   : > { %2383 = vpow2.f32 %v1683_v30 }
 0xa3a   : > { %v2382_v25 = vpop.eup %2381 }
 0xa3b   : > { %v2384_v38 = vpop.eup %2383  ;;  %v1688_v41 = vadd.f32 1.0, %v2382_v25 }
 0xa3c   : > { %v1687_v31 = vadd.f32 1.0, %v2384_v38 }
 0xa3d   : > { %2385 = vrcp.f32 %v1688_v41 }
 0xa3e   : > { %2387 = vrcp.f32 %v1687_v31 }
 0xa47   : > { %v2386_v32 = vpop.eup %2385 }
 0xa48   : > { %v2388_v33 = vpop.eup %2387  ;;  %v1694_v35 = vmul.f32 %v2386_v32, %v1676_v23 }
 0xa49   : > { %v1693_v34 = vmul.f32 %v2388_v33, %v1671_v26 }
 0xa4b   : > { %2177 = vmatprep.mubr.f32.mxu1 %v1693_v34 }
 0xa4c   : > { %2178 = vmatmul.mubr.f32.vlgmr.msra.gmra.mrb[0].mxu1 %v1694_v35 }
 0xb1d   : > { %1795 = sbr.rel (%p1988_p8) target bundleno = 2862 (0xb2e), region = 129 }
 0xb1f   : > { %v2179_v39 = vpop.f32.mrb[0].mxu1 }
 0xb20   : > { %v1789_v40 = vadd.f32 %v2179_v39, %v1696_v36  ;;  %v1779_v42 = vpop.f32.mrb[1].mxu1 }
 0xb21   : > { %v1788_v43 = vadd.f32 %v1779_v42, %v1695_v37 }
 0xb22   : > { %1791 = vst.msk [vmem:[#allocation3 + $0x8] sm:$0xff] %vm1597_vm5, %v1789_v40 }
 0xb23   : > { %1790 = vst.msk [vmem:[#allocation3] sm:$0xff] %vm1597_vm5, %v1788_v43 }
 0xb29   : > { %v1797_v46 = vld [vmem:[#allocation3 + $0x8] sm:$0xff] }
 0xb2a   : > { %v1796_v44 = vld [vmem:[#allocation3] sm:$0xff]  ;;  %v1806_v48 = vadd.f32 %v1989_v45, %v1797_v46 }
 0xb2b   : > { %v1805_v47 = vadd.f32 %v1989_v45, %v1796_v44 }
 0xb2c   : > { %1808 = vst.msk [vmem:[%s2719_s22 + $0x8] sm:$0xff] %vm1597_vm5, %v1806_v48 }
 0xb2d   : > { %1807 = vst.msk [vmem:[%s2719_s22] sm:$0xff] %vm1597_vm5, %v1805_v47 }
 0xb2e PF: > { %s1995_s18 = sshll.u32 %s2491_s19, 8  ;;  %s3020_s16 = sld [smem:[#allocation24_spill]] }
 0xb2f   : > { %s1823_s23 = sshll.u32 %s2719_s22, 4  ;;  %s3022_s4 = sand.u32 1, %s2471_s30   ;;  %s2906_s23 = int_to_ptr.vmem [resolvable:$true] %s1823_s23 }
 0xb30   : > { %s2910_s5 = scalar_lea.sflag [#allocation6], %s3022_s4  ;;  %s2389_s15 = scalar_lea.vmem %s2906_s23, 256 }
 0xb31   : > { %p2390_p9 = scmp.ne.s32.totalorder %s2906_s23, %s2389_s15  ;;  %s2517_s19 = smov [#allocation5]  }
 0xb32   : > { %s2393_s17 = sshll.u32 %s2517_s19, 4  ;;  %s2394_s17 = int_to_ptr.vmem [resolvable:$false] %s2393_s17 }
 0xb33   : > { %p2391_p11 = pnand %p2390_p9, %p2674_p10  ;;  %s2395_s25 = scalar_lea.vmem %s2394_s17, 512 }
 0xb34   : > { %s3021_s14 = smov %s3020_s16  ;;  %s2903_s10 = scalar_lea.hbm %s3020_s16, %s1995_s18 }
 0xb35   : > { %p2392_p13 = pneg %p2391_p11  ;;  %p2396_p0 = scmp.lt.s32.totalorder %s2906_s23, %s2394_s17 }
 0xb36   : > { %p2397_p1 = scmp.lt.s32.totalorder %s2395_s25, %s2389_s15 }
 0xb38   : > { %p2398_p2 = por %p2397_p1, %p2396_p0 }
 0xb3a   : > { %p2399_p3 = pnand %p2398_p2, %p2392_p13 }
 0xb3c   : > { %2402 = shalt.err (!%p2399_p3)
}
 0xb3d   : > { %s2403_s22 = scalar_lea.hbm %s2903_s10, 256  ;;  %s2407_s26 = scalar_lea.hbm %s3021_s14, 512 }
 0xb3e   : > { %p2404_p4 = scmp.ne.s32.totalorder %s2903_s10, %s2403_s22  ;;  %p2408_p7 = scmp.lt.u32.totalorder %s2903_s10, %s3021_s14 }
 0xb3f   : > { %p2409_p8 = scmp.lt.u32.totalorder %s2407_s26, %s2403_s22  ;;  %p2411_p11 = scmp.lt.u32.totalorder %s2403_s22, %s2903_s10 }
 0xb40   : > { %p2405_p5 = pnand %p2404_p4, %p2674_p10 }
 0xb41   : > { %p2410_p9 = por %p2409_p8, %p2408_p7 }
 0xb42   : > { %p2406_p6 = pneg %p2405_p5 }
 0xb43   : > { %p2412_p13 = por %p2411_p11, %p2410_p9 }
 0xb45   : > { %p2413_p0 = pnand %p2412_p13, %p2406_p6 }
 0xb47   : > { %2416 = shalt.err (!%p2413_p0)
}
 0xb48   : > { %s2518_s13 = smov 128   ;;  %s2519_s18 = smov 8  }
 0xb49   : > { %2252 = dma.vmem_to_hbm [thread:$0]  (%p2674_p10), %s2906_s23, 256, %s2903_s10, %s2910_s5, %s2518_s13, %s2518_s13, %s2519_s18  }
 0xb4a PF: > { %s3023_s27 = sld [smem:[#allocation13_spill]]  ;;  %s3024_s24 = sld [smem:[#allocation8_spill]] }
 0xb50   : > { %p2258_p1 = scmp.ge.s32.totalorder %s3023_s27, 2  ;;  %s1838_s4 = sand.u32 1, %s3024_s24  }
 0xb51   : > { %s1839_s15 = scalar_lea.sflag [#allocation6], %s1838_s4 }
 0xb52   : > { %p2255_p2 = pnand %p2258_p1, %p2681_p12 }
 0xb54   : > { %2462 = dma.done.wait (!%p2255_p2), %s1839_s15, 256  }
 0xb55   : > { %2464 = vsyncadd (!%p2255_p2), %s1839_s15, 4294967040  ;;  %s27_s22 = sadd.s32 1, %s3023_s27   ;;  %s3026_s19 = sld [smem:[#allocation9_spill]] }
 0xb56   : > { %p24_p3 = scmp.ge.s32.totalorder %s27_s22, 6   ;;  %s3027_s15 = sld [smem:[#allocation17_spill]] }
 0xb57   : > { %s3028_s16 = sld [smem:[#allocation10_spill]]  ;;  %s3029_s17 = sld [smem:[#allocation16_spill]] }
 0xb58   : > { %s3030_s18 = sld [smem:[#allocation11_spill]]  ;;  %s3031_s8 = sld [smem:[#allocation12_spill]] }
 0xb59   : > { %s3032_s20 = sld [smem:[#allocation14_spill]]  ;;  %s3033_s21 = sld [smem:[#allocation15_spill]] }
 0xb5a   : > { %s3034_s29 = smov %s2471_s30  ;;  %26 = sbr.rel (!%p24_p3) target bundleno = 13 (0xd), region = 192 }
 0xb5b   : > { %s3035_s30 = smov %s3026_s19 }
 0xb5e   : > { %s3036_s19 = smov %s3031_s8 }
 0xb61   :  { %1844 = vsyncpa [#allocation6], 1 }
 0xb62   :  { %1846 = vsyncpa [#allocation6 + $0x1], 1 }

</bundles_post_ra>
